<compile_context>
chip_gen: v7x
topology: tpu7x:2x2x1
jax: 0.10.0
libtpu: 0.0.40
codegen_flags: <defaults>
</compile_context>

<pallas_src>
import numpy as np
import jax
import jax.numpy as jnp
from jax.experimental import pallas as pl
from jax.experimental.pallas import tpu as pltpu


def _layer_norm(x, gamma, beta, eps=1e-5):
    mean = jnp.mean(x, axis=-1, keepdims=True)
    var = jnp.mean(jnp.square(x - mean), axis=-1, keepdims=True)
    return (x - mean) * jax.lax.rsqrt(var + eps) * gamma + beta


def make_mha_kernel(b_blk, len_q, len_k, d_model, n_head, d_k, d_v,
                    inv_temperature, compute_dtype):
    rq = b_blk * len_q
    rk = b_blk * len_k

    def kernel(q_ref, k_ref, v_ref, wq_ref, wk_ref, wv_ref, wfc_ref, vec_ref,
               o_ref, ctx_ref):
        # Flatten the batch block into the matmul M dimension (leading-dim
        # collapse only; the lane dim is untouched).
        xq = q_ref[...].reshape(rq, d_model)            # f32 (rq, d_model)
        xk = k_ref[...].reshape(rk, d_model)
        xv = v_ref[...].reshape(rk, d_model)
        xq_c = xq.astype(compute_dtype)
        xk_c = xk.astype(compute_dtype)
        xv_c = xv.astype(compute_dtype)

        # Fused projections: one matmul per Q/K/V over all heads
        # (N = n_head*d_k / n_head*d_v), f32 accumulation on the MXU.
        q_all = jnp.dot(xq_c, wq_ref[...], preferred_element_type=jnp.float32)
        k_all = jnp.dot(xk_c, wk_ref[...], preferred_element_type=jnp.float32)
        v_all = jnp.dot(xv_c, wv_ref[...], preferred_element_type=jnp.float32)

        for h in range(n_head):                         # static unroll (small)
            # Static lane slices per head, then a row-only reshape to expose
            # the batch-block dim for the batched attention einsums.
            qb = (q_all[:, h * d_k:(h + 1) * d_k]
                  .reshape(b_blk, len_q, d_k).astype(compute_dtype))
            kb = (k_all[:, h * d_k:(h + 1) * d_k]
                  .reshape(b_blk, len_k, d_k).astype(compute_dtype))
            vb = (v_all[:, h * d_v:(h + 1) * d_v]
                  .reshape(b_blk, len_k, d_v).astype(compute_dtype))

            # Scores: batched einsum (no explicit .T); scale folded in as a
            # constant multiply.
            s = jnp.einsum('bqd,bkd->bqk', qb, kb,
                           preferred_element_type=jnp.float32) * inv_temperature
            # Softmax over keys, all in f32.  Exact divide (NOT the approx EUP
            # reciprocal): required to stay inside the 2e-3 reference
            # tolerance.
            s = s - jnp.max(s, axis=-1, keepdims=True)
            p = jnp.exp(s)
            p = p / jnp.sum(p, axis=-1, keepdims=True)
            # attention dropout: identity at eval time.
            ctx = jnp.einsum('bqk,bkd->bqd', p.astype(compute_dtype), vb,
                             preferred_element_type=jnp.float32)
            # Write this head's context into the VMEM scratch at a static lane
            # offset: bounds live ranges to one head, no lane-axis concat.
            ctx_ref[:, h * d_v:(h + 1) * d_v] = ctx.reshape(rq, d_v)

        vecs = vec_ref[...]                             # (5, d_model) f32
        bfc, g0, b0, g1, b1 = (vecs[0:1], vecs[1:2], vecs[2:3],
                               vecs[3:4], vecs[4:5])

        # Residual + LayerNorm0 (requires n_head*d_v == d_model).
        out = _layer_norm(ctx_ref[...] + xq, g0, b0)
        # fc + bias, dropout(identity), residual + LayerNorm.
        y = jnp.dot(out.astype(compute_dtype), wfc_ref[...],
                    preferred_element_type=jnp.float32) + bfc
        y = _layer_norm(y + out, g1, b1)

        o_ref[...] = y.reshape(b_blk, len_q, d_model).astype(o_ref.dtype)

    return kernel


def _num_tensorcores_per_chip():
    """2 TensorCores per chip on v7x, 1 on v5e/v6e (best-effort detection)."""
    try:
        kind = jax.devices()[0].device_kind.lower()
    except Exception:
        return 1
    return 2 if "v7" in kind else 1


def _vmem_bytes_estimate(b_blk, len_q, len_k, d_model, n_head, d_k, d_v,
                         weight_itemsize):
    """Rough per-step VMEM working-set estimate (double-buffered I/O blocks)."""
    rq, rk = b_blk * len_q, b_blk * len_k
    acts = (rq + 2 * rk + rq) * d_model * 4 * 2          # q,k,v,out blocks x2
    wts = (2 * d_model * n_head * d_k + 2 * d_model * n_head * d_v) \
        * weight_itemsize * 2                            # wq,wk,wv,wfc x2 bufs
    scratch = rq * n_head * d_v * 4                      # ctx scratch
    temps = (3 * rq * n_head * max(d_k, d_v)             # q_all/k_all/v_all
             + 2 * b_blk * len_q * len_k                 # scores + probs
             + 2 * rq * d_model) * 4                     # ln / fc temporaries
    return acts + wts + scratch + temps


def _pick_batch_block(sz_b, len_q, len_k, d_model, n_head, d_k, d_v,
                      weight_itemsize, *, row_target=512, min_grid=1,
                      vmem_budget=24 * 1024 * 1024):
    """Batch elements per grid step.

    Bigger blocks amortize the ~0.35us/step grid overhead and fatten the
    matmul M dim; keep >= min_grid 'parallel' steps only when the generation
    has multiple TensorCores (v7x), bounded by a VMEM working-set budget.
    """
    divisors = [d for d in range(1, sz_b + 1) if sz_b % d == 0]
    candidates = [d for d in divisors if sz_b // d >= min_grid] or divisors
    ok = [d for d in candidates
          if d * len_q <= row_target
          and _vmem_bytes_estimate(d, len_q, len_k, d_model, n_head, d_k, d_v,
                                   weight_itemsize) <= vmem_budget]
    return max(ok) if ok else min(candidates)


def multi_head_attention(q, k, v, params, *, n_head, d_k, d_v,
                         use_bf16_matmul=False):
    """q: (sz_b, len_q, d_model); k, v: (sz_b, len_k, d_model); float32.

    use_bf16_matmul is valid on v5e/v6e/v7x (MXU bf16 inputs, f32 accumulate);
    all elementwise math stays f32.
    """
    wq, wk, wv, wfc, bfc, g0, b0, g1, b1 = params
    sz_b, len_q, d_model = q.shape
    len_k = k.shape[1]
    assert k.shape == v.shape and k.shape[0] == sz_b and k.shape[2] == d_model
    assert n_head * d_v == d_model, "residual add needs n_head*d_v == d_model"
    assert wq.shape == (d_model, n_head * d_k)
    assert wk.shape == (d_model, n_head * d_k)
    assert wv.shape == (d_model, n_head * d_v)
    assert wfc.shape == (n_head * d_v, d_model)

    compute_dtype = jnp.bfloat16 if use_bf16_matmul else jnp.float32
    itemsize = jnp.dtype(compute_dtype).itemsize
    inv_temperature = float(1.0 / np.sqrt(d_k))

    # Full (all-heads) projection weights stay as single fat matrices.
    wq_c = wq.astype(compute_dtype)
    wk_c = wk.astype(compute_dtype)
    wv_c = wv.astype(compute_dtype)
    wfc_c = wfc.astype(compute_dtype)
    # Stack the five per-channel vectors into a single (5, d_model) input.
    vecs = jnp.stack([jnp.reshape(bfc, (d_model,)),
                      jnp.reshape(g0, (d_model,)), jnp.reshape(b0, (d_model,)),
                      jnp.reshape(g1, (d_model,)), jnp.reshape(b1, (d_model,))],
                     axis=0).astype(jnp.float32)

    min_grid = _num_tensorcores_per_chip()
    b_blk = _pick_batch_block(sz_b, len_q, len_k, d_model, n_head, d_k, d_v,
                              itemsize, min_grid=min_grid)
    grid = (sz_b // b_blk,)

    vmem_est = _vmem_bytes_estimate(b_blk, len_q, len_k, d_model, n_head,
                                    d_k, d_v, itemsize)
    # Explicit scoped-VMEM limit with headroom; clamp to 64 MiB so the value
    # is valid on v7x (64 MiB physical) as well as v5e/v6e (128 MiB).
    vmem_limit = int(min(64 * 1024 * 1024,
                         max(32 * 1024 * 1024, 2 * vmem_est)))

    kernel = make_mha_kernel(b_blk, len_q, len_k, d_model, n_head, d_k, d_v,
                             inv_temperature, compute_dtype)

    def full(arr):
        nd = arr.ndim
        return pl.BlockSpec(arr.shape, lambda b, _nd=nd: (0,) * _nd)

    return pl.pallas_call(
        kernel,
        out_shape=jax.ShapeDtypeStruct((sz_b, len_q, d_model), jnp.float32),
        grid=grid,
        in_specs=[
            pl.BlockSpec((b_blk, len_q, d_model), lambda b: (b, 0, 0)),   # q
            pl.BlockSpec((b_blk, len_k, d_model), lambda b: (b, 0, 0)),   # k
            pl.BlockSpec((b_blk, len_k, d_model), lambda b: (b, 0, 0)),   # v
            full(wq_c), full(wk_c), full(wv_c), full(wfc_c), full(vecs),
        ],
        out_specs=pl.BlockSpec((b_blk, len_q, d_model), lambda b: (b, 0, 0)),
        scratch_shapes=[pltpu.VMEM((b_blk * len_q, n_head * d_v), jnp.float32)],
        compiler_params=pltpu.CompilerParams(
            dimension_semantics=("parallel",),
            vmem_limit_bytes=vmem_limit),
    )(q, k, v, wq_c, wk_c, wv_c, wfc_c, vecs)


def mha_reference(q, k, v, params, *, n_head, d_k, d_v):
    """Pure-JAX mirror of the PyTorch forward (eval mode, mask=None)."""
    wq, wk, wv, wfc, bfc, g0, b0, g1, b1 = params
    sz_b, len_q, d_model = q.shape
    len_k = k.shape[1]
    temperature = np.power(d_k, 0.5)
    residual = q
    Q = (q @ wq).reshape(sz_b, len_q, n_head, d_k)
    K = (k @ wk).reshape(sz_b, len_k, n_head, d_k)
    V = (v @ wv).reshape(sz_b, len_k, n_head, d_v)
    Q = jnp.transpose(Q, (2, 0, 1, 3)).reshape(-1, len_q, d_k)
    K = jnp.transpose(K, (2, 0, 1, 3)).reshape(-1, len_k, d_k)
    V = jnp.transpose(V, (2, 0, 1, 3)).reshape(-1, len_k, d_v)
    attn = jnp.einsum('bqd,bkd->bqk', Q, K) / temperature
    attn = jax.nn.softmax(attn, axis=2)
    out = jnp.einsum('bqk,bkd->bqd', attn, V)
    out = out.reshape(n_head, sz_b, len_q, d_v)
    out = jnp.transpose(out, (1, 2, 0, 3)).reshape(sz_b, len_q, -1)

    def ln(x, g, b, eps=1e-5):
        m = x.mean(-1, keepdims=True)
        var = ((x - m) ** 2).mean(-1, keepdims=True)
        return (x - m) / jnp.sqrt(var + eps) * g + b

    out = ln(out + residual, g0, b0)
    new_res = out
    out = out @ wfc + bfc
    out = ln(out + new_res, g1, b1)
    return out


if __name__ == "__main__":
    # Small shapes consistent with the module; residual add requires
    # n_head * d_v == d_model.
    n_head, d_model, d_k, d_v = 4, 32, 8, 8
    sz_b, seq = 2, 8

    key = jax.random.PRNGKey(0)
    ks = jax.random.split(key, 8)

    # Parameter init matching the nn.Module __init__ statistics.
    std_qk = np.sqrt(2.0 / (d_model + d_k))
    std_v = np.sqrt(2.0 / (d_model + d_v))
    std_fc = np.sqrt(2.0 / (n_head * d_v + d_model))   # xavier_normal_
    wq = (jax.random.normal(ks[0], (d_model, n_head * d_k)) * std_qk).astype(jnp.float32)
    wk = (jax.random.normal(ks[1], (d_model, n_head * d_k)) * std_qk).astype(jnp.float32)
    wv = (jax.random.normal(ks[2], (d_model, n_head * d_v)) * std_v).astype(jnp.float32)
    wfc = (jax.random.normal(ks[3], (n_head * d_v, d_model)) * std_fc).astype(jnp.float32)
    bfc = jnp.zeros((d_model,), jnp.float32)
    g0 = jnp.ones((d_model,), jnp.float32)
    b0 = jnp.zeros((d_model,), jnp.float32)
    g1 = jnp.ones((d_model,), jnp.float32)
    b1 = jnp.zeros((d_model,), jnp.float32)
    params = (wq, wk, wv, wfc, bfc, g0, b0, g1, b1)

    q = jax.random.normal(ks[4], (sz_b, seq, d_model), jnp.float32)
    k = jax.random.normal(ks[5], (sz_b, seq, d_model), jnp.float32)
    v = jax.random.normal(ks[6], (sz_b, seq, d_model), jnp.float32)

    ref = mha_reference(q, k, v, params, n_head=n_head, d_k=d_k, d_v=d_v)

    # f32 MXU path (exact softmax divide -> matches the reference tightly).
    out = multi_head_attention(q, k, v, params, n_head=n_head, d_k=d_k, d_v=d_v)
    out = jax.block_until_ready(out)
    np.testing.assert_allclose(np.asarray(out), np.asarray(ref),
                               rtol=2e-3, atol=2e-3)

    # bf16 MXU path (valid on v5e/v6e/v7x): matmuls in bf16 with f32
    # accumulation; all elementwise work stays f32.
    out_bf16 = multi_head_attention(q, k, v, params, n_head=n_head, d_k=d_k,
                                    d_v=d_v, use_bf16_matmul=True)
    out_bf16 = jax.block_until_ready(out_bf16)
    np.testing.assert_allclose(np.asarray(out_bf16), np.asarray(ref),
                               rtol=5e-2, atol=5e-2)

    print("KERNEL_OK")
</pallas_src>

<mosaic_0001>
module attributes {stable_mosaic.version = 11 : i64} {
  func.func @kernel(%arg0: i32, %arg1: memref<2x8x32xf32, #tpu.memory_space<vmem>>, %arg2: memref<2x8x32xf32, #tpu.memory_space<vmem>>, %arg3: memref<2x8x32xf32, #tpu.memory_space<vmem>>, %arg4: memref<32x32xf32, #tpu.memory_space<vmem>>, %arg5: memref<32x32xf32, #tpu.memory_space<vmem>>, %arg6: memref<32x32xf32, #tpu.memory_space<vmem>>, %arg7: memref<32x32xf32, #tpu.memory_space<vmem>>, %arg8: memref<5x32xf32, #tpu.memory_space<vmem>>, %arg9: memref<2x8x32xf32, #tpu.memory_space<vmem>>, %arg10: memref<16x32xf32, #tpu.memory_space<vmem>>) attributes {dimension_semantics = [#tpu.dimension_semantics<parallel>], iteration_bounds = array<i64: 1>, scalar_prefetch = 0 : i64, scratch_operands = 1 : i64, tpu.core_type = #tpu.core_type<tc>, window_params = [{transform_indices = @transform_0, window_bounds = array<i64: 2, 8, 32>}, {transform_indices = @transform_1, window_bounds = array<i64: 2, 8, 32>}, {transform_indices = @transform_2, window_bounds = array<i64: 2, 8, 32>}, {pipeline_mode = #tpu.pipeline_mode<synchronous>, transform_indices = @transform_3, window_bounds = array<i64: 32, 32>}, {pipeline_mode = #tpu.pipeline_mode<synchronous>, transform_indices = @transform_4, window_bounds = array<i64: 32, 32>}, {pipeline_mode = #tpu.pipeline_mode<synchronous>, transform_indices = @transform_5, window_bounds = array<i64: 32, 32>}, {pipeline_mode = #tpu.pipeline_mode<synchronous>, transform_indices = @transform_6, window_bounds = array<i64: 32, 32>}, {pipeline_mode = #tpu.pipeline_mode<synchronous>, transform_indices = @transform_7, window_bounds = array<i64: 5, 32>}, {transform_indices = @transform_8, window_bounds = array<i64: 2, 8, 32>}]} {
    %c0 = arith.constant 0 : index
    %c0_0 = arith.constant 0 : index
    %c0_1 = arith.constant 0 : index
    %0 = vector.load %arg1[%c0, %c0_0, %c0_1] : memref<2x8x32xf32, #tpu.memory_space<vmem>>, vector<2x8x32xf32>
    %1 = vector.shape_cast %0 : vector<2x8x32xf32> to vector<16x32xf32>
    %c0_2 = arith.constant 0 : index
    %c0_3 = arith.constant 0 : index
    %c0_4 = arith.constant 0 : index
    %2 = vector.load %arg2[%c0_2, %c0_3, %c0_4] : memref<2x8x32xf32, #tpu.memory_space<vmem>>, vector<2x8x32xf32>
    %3 = vector.shape_cast %2 : vector<2x8x32xf32> to vector<16x32xf32>
    %c0_5 = arith.constant 0 : index
    %c0_6 = arith.constant 0 : index
    %c0_7 = arith.constant 0 : index
    %4 = vector.load %arg3[%c0_5, %c0_6, %c0_7] : memref<2x8x32xf32, #tpu.memory_space<vmem>>, vector<2x8x32xf32>
    %5 = vector.shape_cast %4 : vector<2x8x32xf32> to vector<16x32xf32>
    %c0_8 = arith.constant 0 : index
    %c0_9 = arith.constant 0 : index
    %6 = vector.load %arg4[%c0_8, %c0_9] : memref<32x32xf32, #tpu.memory_space<vmem>>, vector<32x32xf32>
    %cst = arith.constant dense<0.000000e+00> : vector<16x32xf32>
    %7 = tpu.matmul %1, %6, %cst {dimension_numbers = #tpu.dot_dimension_numbers<[1], [0], [0], [1], [0, 0, 1, 1], [], []>} : vector<16x32xf32>, vector<32x32xf32>, vector<16x32xf32> -> vector<16x32xf32>
    %c0_10 = arith.constant 0 : index
    %c0_11 = arith.constant 0 : index
    %8 = vector.load %arg5[%c0_10, %c0_11] : memref<32x32xf32, #tpu.memory_space<vmem>>, vector<32x32xf32>
    %cst_12 = arith.constant dense<0.000000e+00> : vector<16x32xf32>
    %9 = tpu.matmul %3, %8, %cst_12 {dimension_numbers = #tpu.dot_dimension_numbers<[1], [0], [0], [1], [0, 0, 1, 1], [], []>} : vector<16x32xf32>, vector<32x32xf32>, vector<16x32xf32> -> vector<16x32xf32>
    %c0_13 = arith.constant 0 : index
    %c0_14 = arith.constant 0 : index
    %10 = vector.load %arg6[%c0_13, %c0_14] : memref<32x32xf32, #tpu.memory_space<vmem>>, vector<32x32xf32>
    %cst_15 = arith.constant dense<0.000000e+00> : vector<16x32xf32>
    %11 = tpu.matmul %5, %10, %cst_15 {dimension_numbers = #tpu.dot_dimension_numbers<[1], [0], [0], [1], [0, 0, 1, 1], [], []>} : vector<16x32xf32>, vector<32x32xf32>, vector<16x32xf32> -> vector<16x32xf32>
    %12 = vector.extract_strided_slice %7 {offsets = [0, 0], sizes = [16, 8], strides = [1, 1]} : vector<16x32xf32> to vector<16x8xf32>
    %13 = vector.shape_cast %12 : vector<16x8xf32> to vector<2x8x8xf32>
    %14 = vector.extract_strided_slice %9 {offsets = [0, 0], sizes = [16, 8], strides = [1, 1]} : vector<16x32xf32> to vector<16x8xf32>
    %15 = vector.shape_cast %14 : vector<16x8xf32> to vector<2x8x8xf32>
    %16 = vector.extract_strided_slice %11 {offsets = [0, 0], sizes = [16, 8], strides = [1, 1]} : vector<16x32xf32> to vector<16x8xf32>
    %17 = vector.shape_cast %16 : vector<16x8xf32> to vector<2x8x8xf32>
    "tpu.trace_start"() <{level = 10 : i32, message = "bqd,bkd->bqk"}> : () -> ()
    %cst_16 = arith.constant dense<0.000000e+00> : vector<2x8x8xf32>
    %18 = tpu.matmul %13, %15, %cst_16 {dimension_numbers = #tpu.dot_dimension_numbers<[2], [2], [1], [1], [0, 0, 0, 1, 1, 1], [0], [0]>} : vector<2x8x8xf32>, vector<2x8x8xf32>, vector<2x8x8xf32> -> vector<2x8x8xf32>
    "tpu.trace_stop"() : () -> ()
    %cst_17 = arith.constant 0.353553385 : f32
    %19 = vector.broadcast %cst_17 : f32 to vector<2x8x8xf32>
    %20 = arith.mulf %18, %19 : vector<2x8x8xf32>
    %cst_18 = arith.constant dense<0xFF800000> : vector<2x8xf32>
    %21 = vector.multi_reduction <maximumf>, %20, %cst_18 [2] : vector<2x8x8xf32> to vector<2x8xf32>
    %22 = vector.shape_cast %21 : vector<2x8xf32> to vector<2x8x1xf32>
    %23 = vector.broadcast %22 : vector<2x8x1xf32> to vector<2x8x8xf32>
    %24 = arith.subf %20, %23 : vector<2x8x8xf32>
    %25 = math.exp %24 : vector<2x8x8xf32>
    %cst_19 = arith.constant dense<0.000000e+00> : vector<2x8xf32>
    %26 = vector.multi_reduction <add>, %25, %cst_19 [2] : vector<2x8x8xf32> to vector<2x8xf32>
    %27 = vector.shape_cast %26 : vector<2x8xf32> to vector<2x8x1xf32>
    %28 = vector.broadcast %27 : vector<2x8x1xf32> to vector<2x8x8xf32>
    %29 = arith.divf %25, %28 : vector<2x8x8xf32>
    "tpu.trace_start"() <{level = 10 : i32, message = "bqk,bkd->bqd"}> : () -> ()
    %cst_20 = arith.constant dense<0.000000e+00> : vector<2x8x8xf32>
    %30 = tpu.matmul %29, %17, %cst_20 {dimension_numbers = #tpu.dot_dimension_numbers<[2], [1], [1], [2], [0, 0, 0, 1, 1, 2], [0], [0]>} : vector<2x8x8xf32>, vector<2x8x8xf32>, vector<2x8x8xf32> -> vector<2x8x8xf32>
    "tpu.trace_stop"() : () -> ()
    %31 = vector.shape_cast %30 : vector<2x8x8xf32> to vector<16x8xf32>
    %c0_21 = arith.constant 0 : index
    %c0_22 = arith.constant 0 : index
    %32 = vector.load %arg10[%c0_21, %c0_22] : memref<16x32xf32, #tpu.memory_space<vmem>>, vector<16x8xf32>
    tpu.vector_store %arg10[%c0_21, %c0_22], %31 {strides = array<i32>} : memref<16x32xf32, #tpu.memory_space<vmem>>, vector<16x8xf32>,
    %33 = vector.extract_strided_slice %7 {offsets = [0, 8], sizes = [16, 8], strides = [1, 1]} : vector<16x32xf32> to vector<16x8xf32>
    %34 = vector.shape_cast %33 : vector<16x8xf32> to vector<2x8x8xf32>
    %35 = vector.extract_strided_slice %9 {offsets = [0, 8], sizes = [16, 8], strides = [1, 1]} : vector<16x32xf32> to vector<16x8xf32>
    %36 = vector.shape_cast %35 : vector<16x8xf32> to vector<2x8x8xf32>
    %37 = vector.extract_strided_slice %11 {offsets = [0, 8], sizes = [16, 8], strides = [1, 1]} : vector<16x32xf32> to vector<16x8xf32>
    %38 = vector.shape_cast %37 : vector<16x8xf32> to vector<2x8x8xf32>
    "tpu.trace_start"() <{level = 10 : i32, message = "bqd,bkd->bqk"}> : () -> ()
    %cst_23 = arith.constant dense<0.000000e+00> : vector<2x8x8xf32>
    %39 = tpu.matmul %34, %36, %cst_23 {dimension_numbers = #tpu.dot_dimension_numbers<[2], [2], [1], [1], [0, 0, 0, 1, 1, 1], [0], [0]>} : vector<2x8x8xf32>, vector<2x8x8xf32>, vector<2x8x8xf32> -> vector<2x8x8xf32>
    "tpu.trace_stop"() : () -> ()
    %cst_24 = arith.constant 0.353553385 : f32
    %40 = vector.broadcast %cst_24 : f32 to vector<2x8x8xf32>
    %41 = arith.mulf %39, %40 : vector<2x8x8xf32>
    %cst_25 = arith.constant dense<0xFF800000> : vector<2x8xf32>
    %42 = vector.multi_reduction <maximumf>, %41, %cst_25 [2] : vector<2x8x8xf32> to vector<2x8xf32>
    %43 = vector.shape_cast %42 : vector<2x8xf32> to vector<2x8x1xf32>
    %44 = vector.broadcast %43 : vector<2x8x1xf32> to vector<2x8x8xf32>
    %45 = arith.subf %41, %44 : vector<2x8x8xf32>
    %46 = math.exp %45 : vector<2x8x8xf32>
    %cst_26 = arith.constant dense<0.000000e+00> : vector<2x8xf32>
    %47 = vector.multi_reduction <add>, %46, %cst_26 [2] : vector<2x8x8xf32> to vector<2x8xf32>
    %48 = vector.shape_cast %47 : vector<2x8xf32> to vector<2x8x1xf32>
    %49 = vector.broadcast %48 : vector<2x8x1xf32> to vector<2x8x8xf32>
    %50 = arith.divf %46, %49 : vector<2x8x8xf32>
    "tpu.trace_start"() <{level = 10 : i32, message = "bqk,bkd->bqd"}> : () -> ()
    %cst_27 = arith.constant dense<0.000000e+00> : vector<2x8x8xf32>
    %51 = tpu.matmul %50, %38, %cst_27 {dimension_numbers = #tpu.dot_dimension_numbers<[2], [1], [1], [2], [0, 0, 0, 1, 1, 2], [0], [0]>} : vector<2x8x8xf32>, vector<2x8x8xf32>, vector<2x8x8xf32> -> vector<2x8x8xf32>
    "tpu.trace_stop"() : () -> ()
    %52 = vector.shape_cast %51 : vector<2x8x8xf32> to vector<16x8xf32>
    %c0_28 = arith.constant 0 : index
    %c8 = arith.constant 8 : index
    %53 = vector.load %arg10[%c0_28, %c8] : memref<16x32xf32, #tpu.memory_space<vmem>>, vector<16x8xf32>
    tpu.vector_store %arg10[%c0_28, %c8], %52 {strides = array<i32>} : memref<16x32xf32, #tpu.memory_space<vmem>>, vector<16x8xf32>,
    %54 = vector.extract_strided_slice %7 {offsets = [0, 16], sizes = [16, 8], strides = [1, 1]} : vector<16x32xf32> to vector<16x8xf32>
    %55 = vector.shape_cast %54 : vector<16x8xf32> to vector<2x8x8xf32>
    %56 = vector.extract_strided_slice %9 {offsets = [0, 16], sizes = [16, 8], strides = [1, 1]} : vector<16x32xf32> to vector<16x8xf32>
    %57 = vector.shape_cast %56 : vector<16x8xf32> to vector<2x8x8xf32>
    %58 = vector.extract_strided_slice %11 {offsets = [0, 16], sizes = [16, 8], strides = [1, 1]} : vector<16x32xf32> to vector<16x8xf32>
    %59 = vector.shape_cast %58 : vector<16x8xf32> to vector<2x8x8xf32>
    "tpu.trace_start"() <{level = 10 : i32, message = "bqd,bkd->bqk"}> : () -> ()
    %cst_29 = arith.constant dense<0.000000e+00> : vector<2x8x8xf32>
    %60 = tpu.matmul %55, %57, %cst_29 {dimension_numbers = #tpu.dot_dimension_numbers<[2], [2], [1], [1], [0, 0, 0, 1, 1, 1], [0], [0]>} : vector<2x8x8xf32>, vector<2x8x8xf32>, vector<2x8x8xf32> -> vector<2x8x8xf32>
    "tpu.trace_stop"() : () -> ()
    %cst_30 = arith.constant 0.353553385 : f32
    %61 = vector.broadcast %cst_30 : f32 to vector<2x8x8xf32>
    %62 = arith.mulf %60, %61 : vector<2x8x8xf32>
    %cst_31 = arith.constant dense<0xFF800000> : vector<2x8xf32>
    %63 = vector.multi_reduction <maximumf>, %62, %cst_31 [2] : vector<2x8x8xf32> to vector<2x8xf32>
    %64 = vector.shape_cast %63 : vector<2x8xf32> to vector<2x8x1xf32>
    %65 = vector.broadcast %64 : vector<2x8x1xf32> to vector<2x8x8xf32>
    %66 = arith.subf %62, %65 : vector<2x8x8xf32>
    %67 = math.exp %66 : vector<2x8x8xf32>
    %cst_32 = arith.constant dense<0.000000e+00> : vector<2x8xf32>
    %68 = vector.multi_reduction <add>, %67, %cst_32 [2] : vector<2x8x8xf32> to vector<2x8xf32>
    %69 = vector.shape_cast %68 : vector<2x8xf32> to vector<2x8x1xf32>
    %70 = vector.broadcast %69 : vector<2x8x1xf32> to vector<2x8x8xf32>
    %71 = arith.divf %67, %70 : vector<2x8x8xf32>
    "tpu.trace_start"() <{level = 10 : i32, message = "bqk,bkd->bqd"}> : () -> ()
    %cst_33 = arith.constant dense<0.000000e+00> : vector<2x8x8xf32>
    %72 = tpu.matmul %71, %59, %cst_33 {dimension_numbers = #tpu.dot_dimension_numbers<[2], [1], [1], [2], [0, 0, 0, 1, 1, 2], [0], [0]>} : vector<2x8x8xf32>, vector<2x8x8xf32>, vector<2x8x8xf32> -> vector<2x8x8xf32>
    "tpu.trace_stop"() : () -> ()
    %73 = vector.shape_cast %72 : vector<2x8x8xf32> to vector<16x8xf32>
    %c0_34 = arith.constant 0 : index
    %c16 = arith.constant 16 : index
    %74 = vector.load %arg10[%c0_34, %c16] : memref<16x32xf32, #tpu.memory_space<vmem>>, vector<16x8xf32>
    tpu.vector_store %arg10[%c0_34, %c16], %73 {strides = array<i32>} : memref<16x32xf32, #tpu.memory_space<vmem>>, vector<16x8xf32>,
    %75 = vector.extract_strided_slice %7 {offsets = [0, 24], sizes = [16, 8], strides = [1, 1]} : vector<16x32xf32> to vector<16x8xf32>
    %76 = vector.shape_cast %75 : vector<16x8xf32> to vector<2x8x8xf32>
    %77 = vector.extract_strided_slice %9 {offsets = [0, 24], sizes = [16, 8], strides = [1, 1]} : vector<16x32xf32> to vector<16x8xf32>
    %78 = vector.shape_cast %77 : vector<16x8xf32> to vector<2x8x8xf32>
    %79 = vector.extract_strided_slice %11 {offsets = [0, 24], sizes = [16, 8], strides = [1, 1]} : vector<16x32xf32> to vector<16x8xf32>
    %80 = vector.shape_cast %79 : vector<16x8xf32> to vector<2x8x8xf32>
    "tpu.trace_start"() <{level = 10 : i32, message = "bqd,bkd->bqk"}> : () -> ()
    %cst_35 = arith.constant dense<0.000000e+00> : vector<2x8x8xf32>
    %81 = tpu.matmul %76, %78, %cst_35 {dimension_numbers = #tpu.dot_dimension_numbers<[2], [2], [1], [1], [0, 0, 0, 1, 1, 1], [0], [0]>} : vector<2x8x8xf32>, vector<2x8x8xf32>, vector<2x8x8xf32> -> vector<2x8x8xf32>
    "tpu.trace_stop"() : () -> ()
    %cst_36 = arith.constant 0.353553385 : f32
    %82 = vector.broadcast %cst_36 : f32 to vector<2x8x8xf32>
    %83 = arith.mulf %81, %82 : vector<2x8x8xf32>
    %cst_37 = arith.constant dense<0xFF800000> : vector<2x8xf32>
    %84 = vector.multi_reduction <maximumf>, %83, %cst_37 [2] : vector<2x8x8xf32> to vector<2x8xf32>
    %85 = vector.shape_cast %84 : vector<2x8xf32> to vector<2x8x1xf32>
    %86 = vector.broadcast %85 : vector<2x8x1xf32> to vector<2x8x8xf32>
    %87 = arith.subf %83, %86 : vector<2x8x8xf32>
    %88 = math.exp %87 : vector<2x8x8xf32>
    %cst_38 = arith.constant dense<0.000000e+00> : vector<2x8xf32>
    %89 = vector.multi_reduction <add>, %88, %cst_38 [2] : vector<2x8x8xf32> to vector<2x8xf32>
    %90 = vector.shape_cast %89 : vector<2x8xf32> to vector<2x8x1xf32>
    %91 = vector.broadcast %90 : vector<2x8x1xf32> to vector<2x8x8xf32>
    %92 = arith.divf %88, %91 : vector<2x8x8xf32>
    "tpu.trace_start"() <{level = 10 : i32, message = "bqk,bkd->bqd"}> : () -> ()
    %cst_39 = arith.constant dense<0.000000e+00> : vector<2x8x8xf32>
    %93 = tpu.matmul %92, %80, %cst_39 {dimension_numbers = #tpu.dot_dimension_numbers<[2], [1], [1], [2], [0, 0, 0, 1, 1, 2], [0], [0]>} : vector<2x8x8xf32>, vector<2x8x8xf32>, vector<2x8x8xf32> -> vector<2x8x8xf32>
    "tpu.trace_stop"() : () -> ()
    %94 = vector.shape_cast %93 : vector<2x8x8xf32> to vector<16x8xf32>
    %c0_40 = arith.constant 0 : index
    %c24 = arith.constant 24 : index
    %95 = vector.load %arg10[%c0_40, %c24] : memref<16x32xf32, #tpu.memory_space<vmem>>, vector<16x8xf32>
    tpu.vector_store %arg10[%c0_40, %c24], %94 {strides = array<i32>} : memref<16x32xf32, #tpu.memory_space<vmem>>, vector<16x8xf32>,
    %c0_41 = arith.constant 0 : index
    %c0_42 = arith.constant 0 : index
    %96 = vector.load %arg8[%c0_41, %c0_42] : memref<5x32xf32, #tpu.memory_space<vmem>>, vector<5x32xf32>
    %97 = vector.extract_strided_slice %96 {offsets = [0, 0], sizes = [1, 32], strides = [1, 1]} : vector<5x32xf32> to vector<1x32xf32>
    %98 = vector.extract_strided_slice %96 {offsets = [1, 0], sizes = [1, 32], strides = [1, 1]} : vector<5x32xf32> to vector<1x32xf32>
    %99 = vector.extract_strided_slice %96 {offsets = [2, 0], sizes = [1, 32], strides = [1, 1]} : vector<5x32xf32> to vector<1x32xf32>
    %100 = vector.extract_strided_slice %96 {offsets = [3, 0], sizes = [1, 32], strides = [1, 1]} : vector<5x32xf32> to vector<1x32xf32>
    %101 = vector.extract_strided_slice %96 {offsets = [4, 0], sizes = [1, 32], strides = [1, 1]} : vector<5x32xf32> to vector<1x32xf32>
    %c0_43 = arith.constant 0 : index
    %c0_44 = arith.constant 0 : index
    %102 = vector.load %arg10[%c0_43, %c0_44] : memref<16x32xf32, #tpu.memory_space<vmem>>, vector<16x32xf32>
    %103 = arith.addf %102, %1 : vector<16x32xf32>
    %cst_45 = arith.constant dense<0.000000e+00> : vector<16xf32>
    %104 = vector.multi_reduction <add>, %103, %cst_45 [1] : vector<16x32xf32> to vector<16xf32>
    %105 = vector.shape_cast %104 : vector<16xf32> to vector<16x1xf32>
    %cst_46 = arith.constant 3.200000e+01 : f32
    %106 = vector.broadcast %cst_46 : f32 to vector<16x1xf32>
    %107 = arith.divf %105, %106 : vector<16x1xf32>
    %108 = vector.broadcast %107 : vector<16x1xf32> to vector<16x32xf32>
    %109 = arith.subf %103, %108 : vector<16x32xf32>
    %110 = arith.mulf %109, %109 : vector<16x32xf32>
    %cst_47 = arith.constant dense<0.000000e+00> : vector<16xf32>
    %111 = vector.multi_reduction <add>, %110, %cst_47 [1] : vector<16x32xf32> to vector<16xf32>
    %112 = vector.shape_cast %111 : vector<16xf32> to vector<16x1xf32>
    %cst_48 = arith.constant 3.200000e+01 : f32
    %113 = vector.broadcast %cst_48 : f32 to vector<16x1xf32>
    %114 = arith.divf %112, %113 : vector<16x1xf32>
    %115 = vector.broadcast %107 : vector<16x1xf32> to vector<16x32xf32>
    %116 = arith.subf %103, %115 : vector<16x32xf32>
    %cst_49 = arith.constant 9.99999974E-6 : f32
    %117 = vector.broadcast %cst_49 : f32 to vector<16x1xf32>
    %118 = arith.addf %114, %117 : vector<16x1xf32>
    %119 = math.rsqrt %118 : vector<16x1xf32>
    %120 = vector.broadcast %119 : vector<16x1xf32> to vector<16x32xf32>
    %121 = arith.mulf %116, %120 : vector<16x32xf32>
    %122 = vector.broadcast %98 : vector<1x32xf32> to vector<16x32xf32>
    %123 = arith.mulf %121, %122 : vector<16x32xf32>
    %124 = vector.broadcast %99 : vector<1x32xf32> to vector<16x32xf32>
    %125 = arith.addf %123, %124 : vector<16x32xf32>
    %c0_50 = arith.constant 0 : index
    %c0_51 = arith.constant 0 : index
    %126 = vector.load %arg7[%c0_50, %c0_51] : memref<32x32xf32, #tpu.memory_space<vmem>>, vector<32x32xf32>
    %cst_52 = arith.constant dense<0.000000e+00> : vector<16x32xf32>
    %127 = tpu.matmul %125, %126, %cst_52 {dimension_numbers = #tpu.dot_dimension_numbers<[1], [0], [0], [1], [0, 0, 1, 1], [], []>} : vector<16x32xf32>, vector<32x32xf32>, vector<16x32xf32> -> vector<16x32xf32>
    %128 = vector.broadcast %97 : vector<1x32xf32> to vector<16x32xf32>
    %129 = arith.addf %127, %128 : vector<16x32xf32>
    %130 = arith.addf %129, %125 : vector<16x32xf32>
    %cst_53 = arith.constant dense<0.000000e+00> : vector<16xf32>
    %131 = vector.multi_reduction <add>, %130, %cst_53 [1] : vector<16x32xf32> to vector<16xf32>
    %132 = vector.shape_cast %131 : vector<16xf32> to vector<16x1xf32>
    %cst_54 = arith.constant 3.200000e+01 : f32
    %133 = vector.broadcast %cst_54 : f32 to vector<16x1xf32>
    %134 = arith.divf %132, %133 : vector<16x1xf32>
    %135 = vector.broadcast %134 : vector<16x1xf32> to vector<16x32xf32>
    %136 = arith.subf %130, %135 : vector<16x32xf32>
    %137 = arith.mulf %136, %136 : vector<16x32xf32>
    %cst_55 = arith.constant dense<0.000000e+00> : vector<16xf32>
    %138 = vector.multi_reduction <add>, %137, %cst_55 [1] : vector<16x32xf32> to vector<16xf32>
    %139 = vector.shape_cast %138 : vector<16xf32> to vector<16x1xf32>
    %cst_56 = arith.constant 3.200000e+01 : f32
    %140 = vector.broadcast %cst_56 : f32 to vector<16x1xf32>
    %141 = arith.divf %139, %140 : vector<16x1xf32>
    %142 = vector.broadcast %134 : vector<16x1xf32> to vector<16x32xf32>
    %143 = arith.subf %130, %142 : vector<16x32xf32>
    %cst_57 = arith.constant 9.99999974E-6 : f32
    %144 = vector.broadcast %cst_57 : f32 to vector<16x1xf32>
    %145 = arith.addf %141, %144 : vector<16x1xf32>
    %146 = math.rsqrt %145 : vector<16x1xf32>
    %147 = vector.broadcast %146 : vector<16x1xf32> to vector<16x32xf32>
    %148 = arith.mulf %143, %147 : vector<16x32xf32>
    %149 = vector.broadcast %100 : vector<1x32xf32> to vector<16x32xf32>
    %150 = arith.mulf %148, %149 : vector<16x32xf32>
    %151 = vector.broadcast %101 : vector<1x32xf32> to vector<16x32xf32>
    %152 = arith.addf %150, %151 : vector<16x32xf32>
    %153 = vector.shape_cast %152 : vector<16x32xf32> to vector<2x8x32xf32>
    %c0_58 = arith.constant 0 : index
    %c0_59 = arith.constant 0 : index
    %c0_60 = arith.constant 0 : index
    %154 = vector.load %arg9[%c0_58, %c0_59, %c0_60] : memref<2x8x32xf32, #tpu.memory_space<vmem>>, vector<2x8x32xf32>
    tpu.vector_store %arg9[%c0_58, %c0_59, %c0_60], %153 {strides = array<i32>} : memref<2x8x32xf32, #tpu.memory_space<vmem>>, vector<2x8x32xf32>,
    return
  }
  func.func @transform_0(%arg0: i32) -> (i32, i32, i32) {
    %c0_i32 = arith.constant 0 : i32
    %c0_i32_0 = arith.constant 0 : i32
    %c0_i32_1 = arith.constant 0 : i32
    return %arg0, %c0_i32, %c0_i32_0 : i32, i32, i32
  }
  func.func @transform_1(%arg0: i32) -> (i32, i32, i32) {
    %c0_i32 = arith.constant 0 : i32
    %c0_i32_0 = arith.constant 0 : i32
    %c0_i32_1 = arith.constant 0 : i32
    return %arg0, %c0_i32, %c0_i32_0 : i32, i32, i32
  }
  func.func @transform_2(%arg0: i32) -> (i32, i32, i32) {
    %c0_i32 = arith.constant 0 : i32
    %c0_i32_0 = arith.constant 0 : i32
    %c0_i32_1 = arith.constant 0 : i32
    return %arg0, %c0_i32, %c0_i32_0 : i32, i32, i32
  }
  func.func @transform_3(%arg0: i32) -> (i32, i32) {
    %c0_i32 = arith.constant 0 : i32
    %c0_i32_0 = arith.constant 0 : i32
    %c0_i32_1 = arith.constant 0 : i32
    return %c0_i32, %c0_i32_0 : i32, i32
  }
  func.func @transform_4(%arg0: i32) -> (i32, i32) {
    %c0_i32 = arith.constant 0 : i32
    %c0_i32_0 = arith.constant 0 : i32
    %c0_i32_1 = arith.constant 0 : i32
    return %c0_i32, %c0_i32_0 : i32, i32
  }
  func.func @transform_5(%arg0: i32) -> (i32, i32) {
    %c0_i32 = arith.constant 0 : i32
    %c0_i32_0 = arith.constant 0 : i32
    %c0_i32_1 = arith.constant 0 : i32
    return %c0_i32, %c0_i32_0 : i32, i32
  }
  func.func @transform_6(%arg0: i32) -> (i32, i32) {
    %c0_i32 = arith.constant 0 : i32
    %c0_i32_0 = arith.constant 0 : i32
    %c0_i32_1 = arith.constant 0 : i32
    return %c0_i32, %c0_i32_0 : i32, i32
  }
  func.func @transform_7(%arg0: i32) -> (i32, i32) {
    %c0_i32 = arith.constant 0 : i32
    %c0_i32_0 = arith.constant 0 : i32
    %c0_i32_1 = arith.constant 0 : i32
    return %c0_i32, %c0_i32_0 : i32, i32
  }
  func.func @transform_8(%arg0: i32) -> (i32, i32, i32) {
    %c0_i32 = arith.constant 0 : i32
    %c0_i32_0 = arith.constant 0 : i32
    %c0_i32_1 = arith.constant 0 : i32
    return %arg0, %c0_i32, %c0_i32_0 : i32, i32, i32
  }
}

</mosaic_0001>

<bundles_post_ra>
// kernel: tpu_custom_call.1
= control target key start
LH: loop header
LB: loop body
LE: loop exit
PB: predicated region body
PF: predicated region fallthrough
CT: control target
= control target key end

     0   :  { %13 = vsyncpa [#allocation4], 0  ;;  %s2811_s0 = inlined_call_operand.hbm [shape: f32[2,8,32], index: 0, kind: input, shape index: {}]   ;;  %s2812_s1 = inlined_call_operand.hbm [shape: f32[2,8,32], index: 1, kind: input, shape index: {}]   ;;  %s2813_s2 = inlined_call_operand.hbm [shape: f32[2,8,32], index: 2, kind: input, shape index: {}]   ;;  %s2814_s3 = inlined_call_operand.hbm [shape: f32[32,32], index: 3, kind: input, shape index: {}]   ;;  %s2815_s4 = inlined_call_operand.hbm [shape: f32[32,32], index: 4, kind: input, shape index: {}]   ;;  %s2816_s5 = inlined_call_operand.hbm [shape: f32[32,32], index: 5, kind: input, shape index: {}]   ;;  %s2817_s6 = inlined_call_operand.hbm [shape: f32[32,32], index: 6, kind: input, shape index: {}]   ;;  %s2818_s7 = inlined_call_operand.vmem [shape: f32[5,32], index: 7, kind: input, shape index: {}]   ;;  %s2819_s8 = inlined_call_operand.hbm [shape: f32[2,8,32], index: 8, kind: output, shape index: {}]  }
   0x1   :  { %14 = vsyncpa [#allocation7], 0 }
   0x2   :  { %15 = vsyncpa [#allocation10], 0 }
   0x3   :  { %16 = vsyncpa [#allocation13], 0 }
   0x4   :  { %17 = vsyncpa [#allocation5], 0  ;;  %s2425_s27 = smov [#allocation6]   ;;  %s2426_s29 = smov [#allocation9]  }
   0x5   :  { %s35_s28 = sshll.u32 %s2425_s27, 4  ;;  %s59_s30 = sshll.u32 %s2426_s29, 4  ;;  %s36_s28 = int_to_ptr.vmem [resolvable:$true] %s35_s28  ;;  %s2487_s30 = int_to_ptr.vmem [resolvable:$true] %s59_s30 }
   0x6   :  { %s2239_s11 = scalar_lea.hbm %s2812_s1, 256 }
   0x7   :  { %p2240_p0 = scmp.ne.s32.totalorder %s2812_s1, %s2239_s11  ;;  %p2243_p1 = scmp.lt.u32.totalorder %s2239_s11, %s2812_s1 }
   0x9   :  { %p2245_p2 = pnand %p2243_p1, %p2240_p0 }
   0xb   :  { %2248 = shalt.err (!%p2245_p2)
}
   0xc   :  { %s2249_s16 = scalar_lea.vmem %s36_s28, 256  ;;  %p2254_p4 = scmp.lt.s32.totalorder %s36_s28, %s36_s28 }
   0xd   :  { %p2250_p3 = scmp.ne.s32.totalorder %s36_s28, %s2249_s16  ;;  %p2255_p5 = scmp.lt.s32.totalorder %s2249_s16, %s2249_s16 }
   0xf   :  { %p2256_p6 = por %p2255_p5, %p2254_p4 }
  0x11   :  { %p2257_p7 = pnand %p2256_p6, %p2250_p3 }
  0x13   :  { %2260 = shalt.err (!%p2257_p7)
}
  0x14   :  { %s2427_s17 = smov 128   ;;  %s2428_s18 = smov 8  }
  0x15   :  { %41 = dma.hbm_to_vmem [thread:$0]  %s2812_s1, 256, %s36_s28, [#allocation7], %s2427_s17, %s2427_s17, %s2428_s18  }
  0x16   :  { %s2261_s23 = scalar_lea.hbm %s2814_s3, 512 }
  0x17   :  { %p2262_p8 = scmp.ne.s32.totalorder %s2814_s3, %s2261_s23  ;;  %p2265_p9 = scmp.lt.u32.totalorder %s2261_s23, %s2814_s3 }
  0x19   :  { %p2267_p10 = pnand %p2265_p9, %p2262_p8 }
  0x1b   :  { %2270 = shalt.err (!%p2267_p10)
}
  0x1c   :  { %s2271_s29 = scalar_lea.vmem %s2487_s30, 512  ;;  %p2276_p12 = scmp.lt.s32.totalorder %s2487_s30, %s2487_s30 }
  0x1d   :  { %p2272_p11 = scmp.ne.s32.totalorder %s2487_s30, %s2271_s29  ;;  %p2277_p13 = scmp.lt.s32.totalorder %s2271_s29, %s2271_s29 }
  0x1f   :  { %p2278_p0 = por %p2277_p13, %p2276_p12 }
  0x21   :  { %p2279_p1 = pnand %p2278_p0, %p2272_p11 }
  0x23   :  { %2282 = shalt.err (!%p2279_p1)
}
  0x24   :  { %65 = dma.hbm_to_vmem [thread:$0]  %s2814_s3, 512, %s2487_s30, [#allocation10], %s2427_s17, %s2427_s17, %s2428_s18  }
  0x25   :  { %s2429_s9 = smov [#allocation12]   ;;  %s2430_s11 = smov [#allocation3]  }
  0x26   :  { %s83_s10 = sshll.u32 %s2429_s9, 4  ;;  %s23_s12 = sshll.u32 %s2430_s11, 4  ;;  %s84_s10 = int_to_ptr.vmem [resolvable:$true] %s83_s10  ;;  %s2524_s12 = int_to_ptr.vmem [resolvable:$true] %s23_s12 }
  0x27   :  { %s2283_s15 = scalar_lea.hbm %s2816_s5, 512 }
  0x28   :  { %p2284_p2 = scmp.ne.s32.totalorder %s2816_s5, %s2283_s15  ;;  %p2287_p3 = scmp.lt.u32.totalorder %s2283_s15, %s2816_s5 }
  0x2a   :  { %p2289_p4 = pnand %p2287_p3, %p2284_p2 }
  0x2c   :  { %2292 = shalt.err (!%p2289_p4)
}
  0x2d   :  { %s2293_s3 = scalar_lea.vmem %s84_s10, 512  ;;  %p2298_p6 = scmp.lt.s32.totalorder %s84_s10, %s84_s10 }
  0x2e   :  { %p2294_p5 = scmp.ne.s32.totalorder %s84_s10, %s2293_s3  ;;  %p2299_p7 = scmp.lt.s32.totalorder %s2293_s3, %s2293_s3 }
  0x30   :  { %p2300_p8 = por %p2299_p7, %p2298_p6 }
  0x32   :  { %p2301_p9 = pnand %p2300_p8, %p2294_p5 }
  0x34   :  { %2304 = shalt.err (!%p2301_p9)
}
  0x35   :  { %89 = dma.hbm_to_vmem [thread:$0]  %s2816_s5, 512, %s84_s10, [#allocation13], %s2427_s17, %s2427_s17, %s2428_s18  }
  0x36   :  { %s2305_s25 = scalar_lea.hbm %s2811_s0, 256 }
  0x37   :  { %p2306_p10 = scmp.ne.s32.totalorder %s2811_s0, %s2305_s25  ;;  %p2309_p11 = scmp.lt.u32.totalorder %s2305_s25, %s2811_s0 }
  0x39   :  { %p2311_p12 = pnand %p2309_p11, %p2306_p10 }
  0x3b   :  { %2314 = shalt.err (!%p2311_p12)
}
  0x3c   :  { %s2315_s28 = scalar_lea.vmem %s2524_s12, 256  ;;  %p2320_p0 = scmp.lt.s32.totalorder %s2524_s12, %s2524_s12 }
  0x3d   :  { %p2316_p13 = scmp.ne.s32.totalorder %s2524_s12, %s2315_s28  ;;  %p2321_p1 = scmp.lt.s32.totalorder %s2315_s28, %s2315_s28 }
  0x3f   :  { %p2322_p2 = por %p2321_p1, %p2320_p0 }
  0x41   :  { %p2323_p3 = pnand %p2322_p2, %p2316_p13 }
  0x43   :  { %2326 = shalt.err (!%p2323_p3)
}
  0x44   :  { %29 = dma.hbm_to_vmem [thread:$0]  %s2811_s0, 256, %s2524_s12, [#allocation4], %s2427_s17, %s2427_s17, %s2428_s18  }
  0x45   :  { %s2431_s10 = smov [#allocation8]   ;;  %s2432_s13 = smov [#allocation11]  }
  0x46   :  { %s47_s11 = sshll.u32 %s2431_s10, 4  ;;  %s71_s14 = sshll.u32 %s2432_s13, 4  ;;  %s48_s11 = int_to_ptr.vmem [resolvable:$true] %s47_s11  ;;  %s2561_s14 = int_to_ptr.vmem [resolvable:$true] %s71_s14 }
  0x47   :  { %s2327_s19 = scalar_lea.hbm %s2813_s2, 256 }
  0x48   :  { %p2328_p4 = scmp.ne.s32.totalorder %s2813_s2, %s2327_s19  ;;  %p2331_p5 = scmp.lt.u32.totalorder %s2327_s19, %s2813_s2 }
  0x4a   :  { %p2333_p6 = pnand %p2331_p5, %p2328_p4 }
  0x4c   :  { %2336 = shalt.err (!%p2333_p6)
}
  0x4d   :  { %s2337_s0 = scalar_lea.vmem %s48_s11, 256  ;;  %p2342_p8 = scmp.lt.s32.totalorder %s48_s11, %s48_s11 }
  0x4e   :  { %p2338_p7 = scmp.ne.s32.totalorder %s48_s11, %s2337_s0  ;;  %p2343_p9 = scmp.lt.s32.totalorder %s2337_s0, %s2337_s0 }
  0x50   :  { %p2344_p10 = por %p2343_p9, %p2342_p8 }
  0x52   :  { %p2345_p11 = pnand %p2344_p10, %p2338_p7 }
  0x54   :  { %2348 = shalt.err (!%p2345_p11)
}
  0x55   :  { %53 = dma.hbm_to_vmem [thread:$0]  %s2813_s2, 256, %s48_s11, [#allocation7], %s2427_s17, %s2427_s17, %s2428_s18  }
  0x56   :  { %s2349_s25 = scalar_lea.hbm %s2815_s4, 512 }
  0x57   :  { %p2350_p12 = scmp.ne.s32.totalorder %s2815_s4, %s2349_s25  ;;  %p2353_p13 = scmp.lt.u32.totalorder %s2349_s25, %s2815_s4 }
  0x59   :  { %p2355_p0 = pnand %p2353_p13, %p2350_p12 }
  0x5b   :  { %2358 = shalt.err (!%p2355_p0)
}
  0x5c   :  { %s2359_s28 = scalar_lea.vmem %s2561_s14, 512  ;;  %p2364_p2 = scmp.lt.s32.totalorder %s2561_s14, %s2561_s14 }
  0x5d   :  { %p2360_p1 = scmp.ne.s32.totalorder %s2561_s14, %s2359_s28  ;;  %p2365_p3 = scmp.lt.s32.totalorder %s2359_s28, %s2359_s28 }
  0x5f   :  { %p2366_p4 = por %p2365_p3, %p2364_p2 }
  0x61   :  { %p2367_p5 = pnand %p2366_p4, %p2360_p1 }
  0x63   :  { %2370 = shalt.err (!%p2367_p5)
}
  0x64   :  { %77 = dma.hbm_to_vmem [thread:$0]  %s2815_s4, 512, %s2561_s14, [#allocation10], %s2427_s17, %s2427_s17, %s2428_s18  }
  0x65   :  { %s2433_s9 = smov [#allocation14]   ;;  %s2371_s15 = scalar_lea.hbm %s2817_s6, 512 }
  0x66   :  { %s95_s10 = sshll.u32 %s2433_s9, 4  ;;  %p2372_p6 = scmp.ne.s32.totalorder %s2817_s6, %s2371_s15  ;;  %s96_s10 = int_to_ptr.vmem [resolvable:$true] %s95_s10 }
  0x67   :  { %p2375_p7 = scmp.lt.u32.totalorder %s2371_s15, %s2817_s6 }
  0x69   :  { %p2377_p8 = pnand %p2375_p7, %p2372_p6 }
  0x6b   :  { %2380 = shalt.err (!%p2377_p8)
}
  0x6c   :  { %s2381_s3 = scalar_lea.vmem %s96_s10, 512  ;;  %p2386_p10 = scmp.lt.s32.totalorder %s96_s10, %s96_s10 }
  0x6d   :  { %p2382_p9 = scmp.ne.s32.totalorder %s96_s10, %s2381_s3  ;;  %p2387_p11 = scmp.lt.s32.totalorder %s2381_s3, %s2381_s3 }
  0x6f   :  { %p2388_p12 = por %p2387_p11, %p2386_p10 }
  0x71   :  { %p2389_p13 = pnand %p2388_p12, %p2382_p9 }
  0x73   :  { %2392 = shalt.err (!%p2389_p13)
}
  0x74   :  { %101 = dma.hbm_to_vmem [thread:$0]  %s2817_s6, 512, %s96_s10, [#allocation13], %s2427_s17, %s2427_s17, %s2428_s18  }
  0x75   :  { %2415 = dma.done.wait [#allocation4], 256  }
  0x76   :  { %2416 = vsyncadd [#allocation4], 4294967040 }
  0x77   :  { %2417 = dma.done.wait [#allocation7], 512  }
  0x78   :  { %2418 = vsyncadd [#allocation7], 4294966784 }
  0x79   :  { %2419 = dma.done.wait [#allocation10], 1024  }
  0x7a   :  { %2420 = vsyncadd [#allocation10], 4294966272 }
  0x7b   :  { %2421 = dma.done.wait [#allocation13], 1024  }
  0x7c   :  { %2422 = vsyncadd [#allocation13], 4294966272  ;;  %v217_v0 = vld [vmem:[#allocation11] sm:$0xff]  ;;  %v218_v1 = vld [vmem:[#allocation11 + $0x8] sm:$0xff]  ;;  %vm135_vm0 = vcmask 261120   ;;  %v2434_v16 = vmov 0.0  }
  0x7d   :  { %v131_v2 = vld [vmem:[#allocation9] sm:$0xff]  ;;  %v2158_v3 = vpack.c.bf16 %v218_v1, %v217_v0  ;;  %v132_v4 = vld [vmem:[#allocation9 + $0x8] sm:$0xff]  ;;  %v219_v5 = vld [vmem:[#allocation11 + $0x10] sm:$0xff]  ;;  %vm2435_vm1 = vmmov 0   ;;  %vm387_vm2 = vcmask 64512   ;;  %s2436_s6 = smov 120  }
  0x7e   :  { %v220_v6 = vld [vmem:[#allocation11 + $0x18] sm:$0xff]  ;;  %v2150_v7 = vpack.c.bf16 %v132_v4, %v131_v2  ;;  %v133_v9 = vld [vmem:[#allocation9 + $0x10] sm:$0xff]  ;;  %v127_v11 = vld [vmem:[#allocation6] sm:$0xff]  ;;  %s2437_s30 = smov 112   ;;  %s2438_s0 = smov 104   ;;  %vm1054_vm3 = vcmask 130112  }
  0x7f   :  { %v2162_v8 = vpack.c.bf16 %v220_v6, %v219_v5  ;;  %v134_v10 = vld [vmem:[#allocation9 + $0x18] sm:$0xff]  ;;  %2159 = vmatprep.subr.bf16.mxu1 %v2158_v3  ;;  %2045 = vmatprep.mubr.msk.f32.mxu1 %vm135_vm0, %v127_v11  ;;  %v2614_v13 = vld [vmem:[#allocation3] sm:$0xff]  ;;  %v128_v14 = vld [vmem:[#allocation6 + $0x8] sm:$0xff]  ;;  %s2439_s12 = smov 16   ;;  %vm1397_vm4 = vcmask 195712   ;;  %s2440_s22 = smov 24  }
  0x80   :  { %v2154_v12 = vpack.c.bf16 %v134_v10, %v133_v9  ;;  %2161 = vmatpush3.bf16.msra.mxu1 %v2158_v3  ;;  %2151 = vmatprep.subr.bf16.mxu0 %v2150_v7  ;;  %v2618_v15 = vld [vmem:[#allocation3 + $0x8] sm:$0xff]  ;;  %v302_v21 = vld [vmem:[#allocation12] sm:$0xff]  ;;  %v303_v22 = vld [vmem:[#allocation12 + $0x8] sm:$0xff]  ;;  %vm1740_vm5 = vcmask 261312  }
  0x81   :  { %2153 = vmatpush3.bf16.msra.mxu0 %v2150_v7  ;;  %2163 = vmatprep.subr.bf16.mxu1 %v2162_v8  ;;  %v304_v23 = vld [vmem:[#allocation12 + $0x10] sm:$0xff]  ;;  %v2166_v24 = vpack.c.bf16 %v303_v22, %v302_v21  ;;  %v305_v25 = vld [vmem:[#allocation12 + $0x18] sm:$0xff] }
  0x82   :  { %2155 = vmatprep.subr.bf16.mxu0 %v2154_v12  ;;  %2034 = vmatprep.mubr.msk.f32.mxu0 %vm135_vm0, %v2614_v13  ;;  %v129_v26 = vld [vmem:[#allocation8] sm:$0xff]  ;;  %v2170_v27 = vpack.c.bf16 %v305_v25, %v304_v23  ;;  %v130_v28 = vld [vmem:[#allocation8 + $0x8] sm:$0xff] }
  0x84   :  { %2165 = vmatpush3.bf16.msra.mxu1 %v2162_v8 }
  0x85   :  { %2157 = vmatpush3.bf16.msra.mxu0 %v2154_v12  ;;  %2059 = vmatprep.subr.mxu1 %v2434_v16 }
  0x86   :  { %2167 = vmatprep.subr.bf16.mxu0 %v2166_v24 }
  0x87   :  { %2046 = vmatmul.mubr.msk.f32.vlgmr.msra.gmra.mrb[0].mxu1 %vm135_vm0, %v128_v14 }
  0x88   :  { %2035 = vmatmul.mubr.msk.f32.vlgmr.msra.gmra.mrb[0].mxu0 %vm135_vm0, %v2618_v15  ;;  %2061 = vmatprep.mubr.msk.f32.mxu1 %vm2435_vm1, %v2434_v16 }
  0x89   :  { %2056 = vmatprep.mubr.msk.f32.mxu0 %vm135_vm0, %v129_v26  ;;  %2169 = vmatpush3.bf16.msra.mxu0 %v2166_v24 }
  0x8a   :  { %2171 = vmatprep.subr.bf16.mxu0 %v2170_v27 }
  0x8d   :  { %2173 = vmatpush3.bf16.msra.mxu0 %v2170_v27 }
  0x8e   :  { %2079 = vmatprep.subr.mxu0 %v2434_v16 }
  0x90   :  { %2057 = vmatmul.mubr.msk.f32.vlgmr.msra.gmra.mrb[2].mxu0 %vm135_vm0, %v130_v28 }
  0x91   :  { %2081 = vmatprep.mubr.msk.f32.mxu0 %vm2435_vm1, %v2434_v16 }
 0x15a   :  { %v2626_v17 = vpop.f32.mrb[0].mxu1 }
 0x15b   :  { %792 = vrot.lane.b32.xlu1 %v2626_v17, %s2436_s6  ;;  %v2630_v18 = vpop.f32.mrb[1].mxu1  ;;  %v2632_v19 = vpop.f32.mrb[0].mxu0 }
 0x15c   :  { %2060 = vmatpush3.xpose.msk.msra.mxu1 %vm387_vm2, %v2630_v18  ;;  %v2636_v20 = vpop.f32.mrb[1].mxu0 }
 0x15d   :  { %2064 = vmatprep.subr.mxu1 %v2434_v16 }
 0x15f   :  { %712 = vrot.lane.b32.xlu1 %v2636_v20, %s2436_s6  ;;  %2062 = vmatmul.mubr.msk.f32.vlgmr.msra.gmra.mrb[2].mxu1 %vm387_vm2, %v2636_v20 }
 0x160   :  { %2065 = vmatpush3.xpose.msk.msra.mxu1 %vm387_vm2, %v2626_v17  ;;  %2066 = vmatprep.mubr.msk.f32.mxu1 %vm2435_vm1, %v2434_v16 }
 0x161   :  { %2069 = vmatprep.subr.mxu1 %v2434_v16 }
 0x163   :  { %2067 = vmatmul.mubr.msk.f32.vlgmr.msra.gmra.mrb[4].mxu1 %vm387_vm2, %v2632_v19  ;;  %v2670_v50 = vpop.f32.mrb[2].mxu0 }
 0x164   :  { %2071 = vmatprep.mubr.msk.f32.mxu1 %vm2435_vm1, %v2434_v16  ;;  %v2672_v51 = vpop.f32.mrb[3].mxu0 }
 0x165   :  { %2070 = vmatpush3.msra.mxu1 %v2672_v51 }
 0x166   :  { %2074 = vmatprep.subr.mxu1 %v2434_v16 }
 0x1cd   :  { %v793_v41 = vpop.permute.xlu1 %792 }
 0x1d1   :  { %v713_v45 = vpop.permute.xlu1 %712 }
 0x232   :  { %v460_v29 = vpop.f32.mrb[2].mxu1 }
 0x233   :  { %v540_v30 = vmul.f32 0.35355338, %v460_v29  ;;  %v2063_v31 = vpop.f32.mrb[3].mxu1 }
 0x235   :  { %v542_v32 = vsel %vm387_vm2, %v540_v30, -inf }
 0x236   :  { %543 = vmax.xlane.f32.xlu0 %v542_v32  ;;  %v536_v33 = vpop.f32.mrb[4].mxu1 }
 0x237   :  { %v541_v34 = vmul.f32 0.35355338, %v536_v33  ;;  %v2068_v35 = vpop.f32.mrb[5].mxu1 }
 0x239   :  { %v545_v36 = vsel %vm387_vm2, %v541_v34, -inf }
 0x23a   :  { %546 = vmax.xlane.f32.xlu0 %v545_v36 }
 0x250   :  { %714 = vrot.lane.b32.xlu0 %v2630_v18, %s2436_s6 }
 0x2c3   :  { %v544_v37 = vpop.xlane.xlu0 %543 }
 0x2c4   :  { %v548_v38 = vsub.f32 %v540_v30, %v544_v37 }
 0x2c6   :  { %v550_v39 = vmul.f32 1.442695, %v548_v38 }
 0x2c7   :  { %v547_v40 = vpop.xlane.xlu0 %546 }
 0x2c8   :  { %2199 = vpow2.f32 %v550_v39  ;;  %v549_v42 = vsub.f32 %v541_v34, %v547_v40 }
 0x2ca   :  { %v552_v43 = vmul.f32 1.442695, %v549_v42 }
 0x2cb   :  { %v715_v44 = vpop.permute.xlu0 %714 }
 0x2cc   :  { %2201 = vpow2.f32 %v552_v43  ;;  %2080 = vmatpush3.xpose.msk.msra.mxu0 %vm387_vm2, %v715_v44 }
 0x2cd   :  { %2089 = vmatprep.subr.mxu0 %v2434_v16 }
 0x2cf   :  { %2082 = vmatmul.mubr.msk.f32.vlgmr.msra.gmra.mrb[4].mxu0 %vm387_vm2, %v713_v45 }
 0x2d0   :  { %2091 = vmatprep.mubr.msk.f32.mxu0 %vm2435_vm1, %v2434_v16 }
 0x2d2   :  { %v2200_v46 = vpop.eup %2199 }
 0x2d3   :  { %v554_v47 = vsel %vm387_vm2, %v2200_v46, 0.0 }
 0x2d4   :  { %555 = vadd.xlane.f32.xlu1 %v554_v47 }
 0x2d6   :  { %v2202_v48 = vpop.eup %2201 }
 0x2d7   :  { %v557_v49 = vsel %vm387_vm2, %v2202_v48, 0.0 }
 0x2d8   :  { %558 = vadd.xlane.f32.xlu1 %v557_v49 }
 0x2e9   :  { %790 = vrot.lane.b32.xlu1 %v2632_v19, %s2436_s6 }
 0x361   :  { %v556_v52 = vpop.xlane.xlu1 %555 }
 0x362   :  { %2203 = vrcp.f32 %v556_v52 }
 0x365   :  { %v559_v53 = vpop.xlane.xlu1 %558 }
 0x366   :  { %2205 = vrcp.f32 %v559_v53 }
 0x369   :  { %v791_v58 = vpop.permute.xlu1 %790 }
 0x36c   :  { %v2204_v54 = vpop.eup %2203 }
 0x36d   :  { %v561_v55 = vmul.f32 %v2204_v54, %v2200_v46 }
 0x36f   :  { %2072 = vmatmul.mubr.msk.f32.vlgmr.msra.gmra.mrb[6].mxu1 %vm387_vm2, %v561_v55 }
 0x370   :  { %v2206_v56 = vpop.eup %2205  ;;  %2075 = vmatpush3.msra.mxu1 %v2670_v50  ;;  %2076 = vmatprep.mubr.msk.f32.mxu1 %vm2435_vm1, %v2434_v16 }
 0x371   :  { %v563_v57 = vmul.f32 %v2206_v56, %v2202_v48  ;;  %2084 = vmatprep.subr.mxu1 %v2434_v16 }
 0x373   :  { %2077 = vmatmul.mubr.msk.f32.vlgmr.msra.gmra.mrb[8].mxu1 %vm387_vm2, %v563_v57 }
 0x374   :  { %2086 = vmatprep.mubr.msk.f32.mxu1 %vm2435_vm1, %v2434_v16 }
 0x377   :  { %2085 = vmatpush3.xpose.msk.msra.mxu1 %vm387_vm2, %v793_v41 }
 0x378   :  { %2094 = vmatprep.subr.mxu1 %v2434_v16 }
 0x37a   :  { %2087 = vmatmul.mubr.msk.f32.vlgmr.msra.gmra.mrb[10].mxu1 %vm387_vm2, %v791_v58 }
 0x37b   :  { %2096 = vmatprep.mubr.msk.f32.mxu1 %vm2435_vm1, %v2434_v16 }
 0x3a2   :  { %v786_v59 = vpop.f32.mrb[4].mxu0 }
 0x3a3   :  { %v868_v60 = vmul.f32 0.35355338, %v786_v59  ;;  %v2083_v61 = vpop.f32.mrb[5].mxu0 }
 0x3a5   :  { %v870_v62 = vsel %vm387_vm2, %v868_v60, -inf }
 0x3a6   :  { %871 = vmax.xlane.f32.xlu0 %v870_v62 }
 0x433   :  { %v872_v63 = vpop.xlane.xlu0 %871 }
 0x434   :  { %v876_v0 = vsub.f32 %v868_v60, %v872_v63 }
 0x436   :  { %v878_v1 = vmul.f32 1.442695, %v876_v0 }
 0x438   :  { %2207 = vpow2.f32 %v878_v1 }
 0x442   :  { %v2208_v2 = vpop.eup %2207  ;;  %v633_v3 = vpop.f32.mrb[6].mxu1 }
 0x443   :  { %710 = vst.msk [vmem:[#allocation2] sm:$0xff] %vm387_vm2, %v633_v3  ;;  %v2073_v4 = vpop.f32.mrb[7].mxu1  ;;  %v882_v5 = vsel %vm387_vm2, %v2208_v2, 0.0 }
 0x444   :  { %883 = vadd.xlane.f32.xlu0 %v882_v5 }
 0x446   :  { %v706_v6 = vpop.f32.mrb[8].mxu1 }
 0x447   :  { %711 = vst.msk [vmem:[#allocation2 + $0x8] sm:$0xff] %vm387_vm2, %v706_v6  ;;  %v2078_v7 = vpop.f32.mrb[9].mxu1 }
 0x44d   :  { %v864_v8 = vpop.f32.mrb[10].mxu1 }
 0x44e   :  { %v869_v9 = vmul.f32 0.35355338, %v864_v8  ;;  %v2088_v10 = vpop.f32.mrb[11].mxu1 }
 0x450   :  { %v873_v11 = vsel %vm387_vm2, %v869_v9, -inf }
 0x451   :  { %874 = vmax.xlane.f32.xlu1 %v873_v11 }
 0x45a   :  { %893 = vrot.lane.b32.xlu0 %v2672_v51, %s2436_s6 }
 0x462   :  { %970 = vrot.lane.b32.xlu1 %v2670_v50, %s2436_s6 }
 0x466   :  { %1059 = vrot.lane.b32.xlu1 %v2630_v18, %s2437_s30 }
 0x46a   :  { %1137 = vrot.lane.b32.xlu1 %v2626_v17, %s2437_s30 }
 0x46e   :  { %1135 = vrot.lane.b32.xlu1 %v2632_v19, %s2437_s30 }
 0x4d1   :  { %v884_v12 = vpop.xlane.xlu0 %883 }
 0x4d2   :  { %2209 = vrcp.f32 %v884_v12 }
 0x4d5   :  { %v894_v14 = vpop.permute.xlu0 %893 }
 0x4d6   :  { %2090 = vmatpush3.msra.mxu0 %v894_v14 }
 0x4d7   :  { %2099 = vmatprep.subr.mxu0 %v2434_v16 }
 0x4dc   :  { %v2210_v21 = vpop.eup %2209 }
 0x4dd   :  { %v889_v22 = vmul.f32 %v2210_v21, %v2208_v2 }
 0x4de   :  { %v875_v23 = vpop.xlane.xlu1 %874 }
 0x4df   :  { %v877_v24 = vsub.f32 %v869_v9, %v875_v23  ;;  %2092 = vmatmul.mubr.msk.f32.vlgmr.msra.gmra.mrb[6].mxu0 %vm387_vm2, %v889_v22 }
 0x4e0   :  { %2101 = vmatprep.mubr.msk.f32.mxu0 %vm2435_vm1, %v2434_v16 }
 0x4e1   :  { %v880_v25 = vmul.f32 1.442695, %v877_v24 }
 0x4e2   :  { %v971_v26 = vpop.permute.xlu1 %970 }
 0x4e3   :  { %2211 = vpow2.f32 %v880_v25  ;;  %2095 = vmatpush3.msra.mxu1 %v971_v26 }
 0x4e4   :  { %2104 = vmatprep.subr.mxu1 %v2434_v16 }
 0x4e6   :  { %v1060_v27 = vpop.permute.xlu1 %1059 }
 0x4e7   :  { %2100 = vmatpush3.xpose.msk.msra.mxu0 %vm387_vm2, %v1060_v27 }
 0x4e8   :  { %2109 = vmatprep.subr.mxu0 %v2434_v16 }
 0x4ea   :  { %v1138_v33 = vpop.permute.xlu1 %1137 }
 0x4ed   :  { %v2212_v28 = vpop.eup %2211 }
 0x4ee   :  { %v885_v29 = vsel %vm387_vm2, %v2212_v28, 0.0  ;;  %v1136_v35 = vpop.permute.xlu1 %1135 }
 0x4ef   :  { %886 = vadd.xlane.f32.xlu0 %v885_v29 }
 0x505   :  { %1057 = vrot.lane.b32.xlu0 %v2636_v20, %s2437_s30 }
 0x57c   :  { %v887_v30 = vpop.xlane.xlu0 %886 }
 0x57d   :  { %2213 = vrcp.f32 %v887_v30 }
 0x580   :  { %v1058_v31 = vpop.permute.xlu0 %1057 }
 0x581   :  { %2102 = vmatmul.mubr.msk.f32.vlgmr.msra.gmra.mrb[8].mxu0 %vm387_vm2, %v1058_v31 }
 0x582   :  { %2111 = vmatprep.mubr.msk.f32.mxu0 %vm2435_vm1, %v2434_v16 }
 0x587   :  { %v2214_v32 = vpop.eup %2213 }
 0x588   :  { %v891_v34 = vmul.f32 %v2214_v32, %v2212_v28 }
 0x58a   :  { %2097 = vmatmul.mubr.msk.f32.vlgmr.msra.gmra.mrb[12].mxu1 %vm387_vm2, %v891_v34 }
 0x58b   :  { %2105 = vmatpush3.xpose.msk.msra.mxu1 %vm387_vm2, %v1138_v33  ;;  %2106 = vmatprep.mubr.msk.f32.mxu1 %vm2435_vm1, %v2434_v16 }
 0x58c   :  { %2114 = vmatprep.subr.mxu1 %v2434_v16 }
 0x58e   :  { %2107 = vmatmul.mubr.msk.f32.vlgmr.msra.gmra.mrb[14].mxu1 %vm387_vm2, %v1136_v35 }
 0x58f   :  { %2116 = vmatprep.mubr.msk.f32.mxu1 %vm2435_vm1, %v2434_v16 }
 0x5b2   :  { %v2725_v36 = vpop.f32.mrb[6].mxu0 }
 0x5b3   :  { %v2093_v37 = vpop.f32.mrb[7].mxu0 }
 0x654   :  { %v1131_v38 = vpop.f32.mrb[8].mxu0 }
 0x655   :  { %v1213_v39 = vmul.f32 0.35355338, %v1131_v38  ;;  %v2103_v40 = vpop.f32.mrb[9].mxu0 }
 0x657   :  { %v1215_v41 = vsel %vm387_vm2, %v1213_v39, -inf }
 0x658   :  { %1216 = vmax.xlane.f32.xlu0 %v1215_v41 }
 0x65d   :  { %v2728_v42 = vpop.f32.mrb[12].mxu1 }
 0x65e   :  { %v2098_v43 = vpop.f32.mrb[13].mxu1 }
 0x661   :  { %v1209_v44 = vpop.f32.mrb[14].mxu1 }
 0x662   :  { %v1214_v45 = vmul.f32 0.35355338, %v1209_v44  ;;  %v2108_v46 = vpop.f32.mrb[15].mxu1 }
 0x664   :  { %v1218_v47 = vsel %vm387_vm2, %v1214_v45, -inf }
 0x665   :  { %1219 = vmax.xlane.f32.xlu1 %v1218_v47 }
 0x676   :  { %1313 = vrot.lane.b32.xlu1 %v2670_v50, %s2437_s30 }
 0x67a   :  { %1402 = vrot.lane.b32.xlu1 %v2630_v18, %s2438_s0 }
 0x67e   :  { %1480 = vrot.lane.b32.xlu1 %v2626_v17, %s2438_s0 }
 0x682   :  { %1478 = vrot.lane.b32.xlu1 %v2632_v19, %s2438_s0 }
 0x6e5   :  { %v1217_v48 = vpop.xlane.xlu0 %1216 }
 0x6e6   :  { %v1221_v49 = vsub.f32 %v1213_v39, %v1217_v48 }
 0x6e8   :  { %v1223_v52 = vmul.f32 1.442695, %v1221_v49 }
 0x6ea   :  { %2215 = vpow2.f32 %v1223_v52 }
 0x6f2   :  { %v1220_v53 = vpop.xlane.xlu1 %1219 }
 0x6f3   :  { %v1222_v17 = vsub.f32 %v1214_v45, %v1220_v53 }
 0x6f4   :  { %v2216_v54 = vpop.eup %2215 }
 0x6f5   :  { %v1227_v55 = vsel %vm387_vm2, %v2216_v54, 0.0  ;;  %v1225_v18 = vmul.f32 1.442695, %v1222_v17 }
 0x6f6   :  { %1228 = vadd.xlane.f32.xlu0 %v1227_v55  ;;  %v1314_v56 = vpop.permute.xlu1 %1313 }
 0x6f7   :  { %2115 = vmatpush3.msra.mxu1 %v1314_v56  ;;  %2217 = vpow2.f32 %v1225_v18 }
 0x6f8   :  { %2124 = vmatprep.subr.mxu1 %v2434_v16 }
 0x6fa   :  { %v1403_v62 = vpop.permute.xlu1 %1402 }
 0x6fe   :  { %v1481_v1 = vpop.permute.xlu1 %1480 }
 0x701   :  { %v2218_v19 = vpop.eup %2217 }
 0x702   :  { %v1230_v57 = vsel %vm387_vm2, %v2218_v19, 0.0  ;;  %v1479_v3 = vpop.permute.xlu1 %1478 }
 0x70c   :  { %1237 = vrot.lane.b32.xlu0 %v2672_v51, %s2437_s30 }
 0x72b   :  { %1231 = vadd.xlane.f32.xlu0 %v1230_v57 }
 0x741   :  { %1400 = vrot.lane.b32.xlu0 %v2636_v20, %s2438_s0 }
 0x783   :  { %v1229_v58 = vpop.xlane.xlu0 %1228 }
 0x784   :  { %2219 = vrcp.f32 %v1229_v58 }
 0x787   :  { %v1238_v59 = vpop.permute.xlu0 %1237 }
 0x788   :  { %2110 = vmatpush3.msra.mxu0 %v1238_v59 }
 0x789   :  { %2119 = vmatprep.subr.mxu0 %v2434_v16 }
 0x78e   :  { %v2220_v60 = vpop.eup %2219 }
 0x78f   :  { %v1234_v61 = vmul.f32 %v2220_v60, %v2216_v54 }
 0x791   :  { %2112 = vmatmul.mubr.msk.f32.vlgmr.msra.gmra.mrb[10].mxu0 %vm387_vm2, %v1234_v61 }
 0x792   :  { %2120 = vmatpush3.xpose.msk.msra.mxu0 %vm387_vm2, %v1403_v62  ;;  %2121 = vmatprep.mubr.msk.f32.mxu0 %vm2435_vm1, %v2434_v16  ;;  %v1787_v62 = vld [vmem:[#allocation14] sm:$0xff] }
 0x793   :  { %2129 = vmatprep.subr.mxu0 %v2434_v16 }
 0x7b8   :  { %v1232_v63 = vpop.xlane.xlu0 %1231 }
 0x7b9   :  { %2221 = vrcp.f32 %v1232_v63  ;;  %v1788_v63 = vld [vmem:[#allocation14 + $0x8] sm:$0xff] }
 0x7bc   :  { %v1401_v20 = vpop.permute.xlu0 %1400 }
 0x7bd   :  { %2122 = vmatmul.mubr.msk.f32.vlgmr.msra.gmra.mrb[12].mxu0 %vm387_vm2, %v1401_v20  ;;  %v1789_v20 = vld [vmem:[#allocation14 + $0x10] sm:$0xff] }
 0x7be   :  { %2131 = vmatprep.mubr.msk.f32.mxu0 %vm2435_vm1, %v2434_v16 }
 0x7c3   :  { %v2222_v0 = vpop.eup %2221 }
 0x7c4   :  { %v1236_v2 = vmul.f32 %v2222_v0, %v2218_v19  ;;  %v1790_v0 = vld [vmem:[#allocation14 + $0x18] sm:$0xff] }
 0x7c6   :  { %2117 = vmatmul.mubr.msk.f32.vlgmr.msra.gmra.mrb[16].mxu1 %vm387_vm2, %v1236_v2 }
 0x7c7   :  { %2125 = vmatpush3.xpose.msk.msra.mxu1 %vm387_vm2, %v1481_v1  ;;  %2126 = vmatprep.mubr.msk.f32.mxu1 %vm2435_vm1, %v2434_v16  ;;  %v2178_v1 = vpack.c.bf16 %v1790_v0, %v1789_v20 }
 0x7c8   :  { %2134 = vmatprep.subr.mxu1 %v2434_v16 }
 0x7ca   :  { %2127 = vmatmul.mubr.msk.f32.vlgmr.msra.gmra.mrb[18].mxu1 %vm387_vm2, %v1479_v3 }
 0x7cb   :  { %2136 = vmatprep.mubr.msk.f32.mxu1 %vm2435_vm1, %v2434_v16 }
 0x864   :  { %v1309_v4 = vpop.f32.mrb[10].mxu0 }
 0x865   :  { %v2113_v5 = vpop.f32.mrb[11].mxu0 }
 0x890   :  { %v1474_v6 = vpop.f32.mrb[12].mxu0 }
 0x891   :  { %v1556_v7 = vmul.f32 0.35355338, %v1474_v6  ;;  %v2123_v8 = vpop.f32.mrb[13].mxu0 }
 0x893   :  { %v1558_v9 = vsel %vm387_vm2, %v1556_v7, -inf }
 0x894   :  { %1559 = vmax.xlane.f32.xlu0 %v1558_v9 }
 0x899   :  { %v1385_v10 = vpop.f32.mrb[16].mxu1 }
 0x89a   :  { %v2118_v11 = vpop.f32.mrb[17].mxu1 }
 0x89b   :  { %v1743_v11 = vld [vmem:[%s2818_s7] sm:$0x1f]  ;;  %s2441_s7 = smov [#allocation15]  }
 0x89c   :  { %s1923_s25 = sshll.u32 %s2441_s7, 4  ;;  %s1924_s25 = int_to_ptr.vmem [resolvable:$true] %s1923_s25 }
 0x89d   :  { %v1552_v12 = vpop.f32.mrb[18].mxu1  ;;  %s2393_s26 = scalar_lea.vmem %s1924_s25, 256  ;;  %p2398_p1 = scmp.lt.s32.totalorder %s1924_s25, %s1924_s25 }
 0x89e   :  { %v1557_v14 = vmul.f32 0.35355338, %v1552_v12  ;;  %v2128_v21 = vpop.f32.mrb[19].mxu1  ;;  %p2394_p0 = scmp.ne.s32.totalorder %s1924_s25, %s2393_s26  ;;  %p2399_p2 = scmp.lt.s32.totalorder %s2393_s26, %s2393_s26 }
 0x8a0   :  { %v1561_v22 = vsel %vm387_vm2, %v1557_v14, -inf  ;;  %p2400_p3 = por %p2399_p2, %p2398_p1 }
 0x8a1   :  { %1562 = vmax.xlane.f32.xlu1 %v1561_v22 }
 0x8a2   :  { %p2401_p4 = pnand %p2400_p3, %p2394_p0 }
 0x8b2   :  { %1656 = vrot.lane.b32.xlu1 %v2670_v50, %s2438_s0 }
 0x8b6   :  { %1048 = vrot.lane.b32.xlu1 %v2725_v36, %s2428_s18 }
 0x8ba   :  { %1050 = vrot.lane.b32.xlu1 %v2728_v42, %s2428_s18 }
 0x8be   :  { %1393 = vrot.lane.b32.xlu1 %v1385_v10, %s2439_s12 }
 0x921   :  { %v1560_v16 = vpop.xlane.xlu0 %1559 }
 0x922   :  { %v1564_v23 = vsub.f32 %v1556_v7, %v1560_v16 }
 0x924   :  { %v1566_v24 = vmul.f32 1.442695, %v1564_v23 }
 0x926   :  { %2223 = vpow2.f32 %v1566_v24 }
 0x92e   :  { %v1563_v25 = vpop.xlane.xlu1 %1562 }
 0x92f   :  { %v1565_v26 = vsub.f32 %v1557_v14, %v1563_v25 }
 0x930   :  { %v2224_v27 = vpop.eup %2223 }
 0x931   :  { %v1568_v28 = vmul.f32 1.442695, %v1565_v26  ;;  %v1570_v29 = vsel %vm387_vm2, %v2224_v27, 0.0 }
 0x932   :  { %1571 = vadd.xlane.f32.xlu0 %v1570_v29  ;;  %v1657_v50 = vpop.permute.xlu1 %1656 }
 0x933   :  { %2225 = vpow2.f32 %v1568_v28  ;;  %2135 = vmatpush3.msra.mxu1 %v1657_v50 }
 0x936   :  { %v1049_v30 = vpop.permute.xlu1 %1048 }
 0x937   :  { %1055 = vst.msk [vmem:[#allocation2] sm:$0xff] %vm1054_vm3, %v1049_v30 }
 0x93a   :  { %v1051_v31 = vpop.permute.xlu1 %1050 }
 0x93b   :  { %1056 = vst.msk [vmem:[#allocation2 + $0x8] sm:$0xff] %vm1054_vm3, %v1051_v31 }
 0x93d   :  { %v2226_v32 = vpop.eup %2225 }
 0x93e   :  { %v1394_v33 = vpop.permute.xlu1 %1393  ;;  %v1573_v34 = vsel %vm387_vm2, %v2226_v32, 0.0 }
 0x93f   :  { %1399 = vst.msk [vmem:[#allocation2 + $0x8] sm:$0xff] %vm1397_vm4, %v1394_v33  ;;  %1574 = vadd.xlane.f32.xlu0 %v1573_v34 }
 0x955   :  { %1580 = vrot.lane.b32.xlu0 %v2672_v51, %s2438_s0 }
 0x959   :  { %1391 = vrot.lane.b32.xlu0 %v1309_v4, %s2439_s12  ;;  %v1775_v4 = vlaneseq }
 0x95b   :  { %v1776_v6 = vshrl.u32 %v1775_v4, 7 }
 0x95d   :  { %v1777_v9 = vsub.s32 1, %v1776_v6  ;;  %v1783_v12 = vsub.s32 2, %v1776_v6  ;;  %v1793_v29 = vsub.s32 0, %v1776_v6 }
 0x95f   :  { %v1778_v14 = vrot.slane %v1743_v11, %v1777_v9  ;;  %v1784_v16 = vrot.slane %v1743_v11, %v1783_v12  ;;  %v1794_v50 = vrot.slane %v1743_v11, %v1793_v29 }
 0x9bf   :  { %v1572_v35 = vpop.xlane.xlu0 %1571 }
 0x9c0   :  { %2227 = vrcp.f32 %v1572_v35 }
 0x9ca   :  { %v2228_v37 = vpop.eup %2227 }
 0x9cb   :  { %v1577_v38 = vmul.f32 %v2228_v37, %v2224_v27 }
 0x9cc   :  { %v1575_v36 = vpop.xlane.xlu0 %1574 }
 0x9cd   :  { %2229 = vrcp.f32 %v1575_v36 }
 0x9d0   :  { %v1581_v39 = vpop.permute.xlu0 %1580 }
 0x9d1   :  { %2130 = vmatpush3.msra.mxu0 %v1581_v39 }
 0x9d2   :  { %2132 = vmatmul.mubr.msk.f32.vlgmr.msra.gmra.mrb[14].mxu0 %vm387_vm2, %v1577_v38 }
 0x9d4   :  { %v1392_v40 = vpop.permute.xlu0 %1391 }
 0x9d5   :  { %1398 = vst.msk [vmem:[#allocation2] sm:$0xff] %vm1397_vm4, %v1392_v40 }
 0x9d7   :  { %v2230_v41 = vpop.eup %2229 }
 0x9d8   :  { %v1579_v42 = vmul.f32 %v2230_v41, %v2226_v32 }
 0x9da   :  { %2137 = vmatmul.mubr.msk.f32.vlgmr.msra.gmra.mrb[20].mxu1 %vm387_vm2, %v1579_v42 }
 0xaa5   :  { %v1652_v43 = vpop.f32.mrb[14].mxu0 }
 0xaa6   :  { %1734 = vrot.lane.b32.xlu0 %v1652_v43, %s2440_s22  ;;  %v2133_v51 = vpop.f32.mrb[15].mxu0 }
 0xaad   :  { %v1728_v44 = vpop.f32.mrb[20].mxu1 }
 0xaae   :  { %1736 = vrot.lane.b32.xlu1 %v1728_v44, %s2440_s22  ;;  %v2138_v45 = vpop.f32.mrb[21].mxu1 }
 0xb18   :  { %v1735_v46 = vpop.permute.xlu0 %1734 }
 0xb19   :  { %1741 = vst.msk [vmem:[#allocation2] sm:$0xff] %vm1740_vm5, %v1735_v46 }
 0xb20   :  { %v1737_v47 = vpop.permute.xlu1 %1736  ;;  %v1744_v48 = vld [vmem:[#allocation2] sm:$0xff] }
 0xb21   :  { %1742 = vst.msk [vmem:[#allocation2 + $0x8] sm:$0xff] %vm1740_vm5, %v1737_v47  ;;  %v1746_v49 = vadd.f32 %v1744_v48, %v2614_v13 }
 0xb23   :  { %v1748_v52 = vsel %vm135_vm0, %v1746_v49, 0.0 }
 0xb24   :  { %1749 = vadd.xlane.f32.xlu0 %v1748_v52 }
 0xb28   :  { %v1745_v53 = vld [vmem:[#allocation2 + $0x8] sm:$0xff] }
 0xb29   :  { %v1747_v54 = vadd.f32 %v1745_v53, %v2618_v15  ;;  %v2174_v15 = vpack.c.bf16 %v1788_v63, %v1787_v62 }
 0xb2b   :  { %v1751_v55 = vsel %vm135_vm0, %v1747_v54, 0.0  ;;  %2175 = vmatprep.subr.bf16.mxu0 %v2174_v15 }
 0xb2c   :  { %1752 = vadd.xlane.f32.xlu1 %v1751_v55  ;;  %2177 = vmatpush3.bf16.msra.mxu0 %v2174_v15  ;;  %v1906_v55 = vsub.s32 3, %v1776_v6 }
 0xb2d   :  { %2179 = vmatprep.subr.bf16.mxu0 %v2178_v1 }
 0xb30   :  { %2181 = vmatpush3.bf16.msra.mxu0 %v2178_v1 }
 0xbb1   :  { %v1750_v56 = vpop.xlane.xlu0 %1749 }
 0xbb2   :  { %v1755_v17 = vmul.f32 0.03125, %v1750_v56  ;;  %v1912_v56 = vsub.s32 4, %v1776_v6 }
 0xbb4   :  { %v1757_v18 = vsub.f32 %v1746_v49, %v1755_v17  ;;  %v1907_v17 = vrot.slane %v1743_v11, %v1906_v55 }
 0xbb6   :  { %v1759_v19 = vmul.f32 %v1757_v18, %v1757_v18 }
 0xbb8   :  { %v1761_v57 = vsel %vm135_vm0, %v1759_v19, 0.0 }
 0xbb9   :  { %1762 = vadd.xlane.f32.xlu0 %v1761_v57  ;;  %v1753_v58 = vpop.xlane.xlu1 %1752 }
 0xbba   :  { %v1756_v59 = vmul.f32 0.03125, %v1753_v58  ;;  %v1913_v58 = vrot.slane %v1743_v11, %v1912_v56 }
 0xbbc   :  { %v1758_v60 = vsub.f32 %v1747_v54, %v1756_v59 }
 0xbbe   :  { %v1760_v13 = vmul.f32 %v1758_v60, %v1758_v60 }
 0xbc0   :  { %v1764_v61 = vsel %vm135_vm0, %v1760_v13, 0.0 }
 0xbc1   :  { %1765 = vadd.xlane.f32.xlu0 %v1764_v61 }
 0xc46   :  { %v1763_v2 = vpop.xlane.xlu0 %1762 }
 0xc47   :  { %v1767_v3 = vmul.f32 0.03125, %v1763_v2 }
 0xc49   :  { %v1769_v5 = vadd.f32 1e-05, %v1767_v3 }
 0xc4b   :  { %2231 = vrsqrt.f32 %v1769_v5 }
 0xc4e   :  { %v1766_v7 = vpop.xlane.xlu0 %1765 }
 0xc4f   :  { %v1768_v8 = vmul.f32 0.03125, %v1766_v7 }
 0xc51   :  { %v1770_v10 = vadd.f32 1e-05, %v1768_v8 }
 0xc53   :  { %2233 = vrsqrt.f32 %v1770_v10 }
 0xc55   :  { %v2232_v21 = vpop.eup %2231 }
 0xc56   :  { %v1773_v22 = vmul.f32 %v2232_v21, %v1757_v18 }
 0xc58   :  { %v1779_v23 = vmul.f32 %v1778_v14, %v1773_v22 }
 0xc5a   :  { %v1785_v24 = vadd.f32 %v1784_v16, %v1779_v23 }
 0xc5c   :  { %2147 = vmatprep.mubr.msk.f32.mxu0 %vm135_vm0, %v1785_v24 }
 0xc5d   :  { %v2234_v25 = vpop.eup %2233 }
 0xc5e   :  { %v1774_v26 = vmul.f32 %v2234_v25, %v1758_v60 }
 0xc60   :  { %v1780_v27 = vmul.f32 %v1778_v14, %v1774_v26 }
 0xc62   :  { %v1786_v28 = vadd.f32 %v1784_v16, %v1780_v27 }
 0xc64   :  { %2148 = vmatmul.mubr.msk.f32.vlgmr.msra.gmra.mrb[16].mxu0 %vm135_vm0, %v1786_v28 }
 0xd37   :  { %v2149_v30 = vpop.f32.mrb[16].mxu0 }
 0xd38   :  { %v1873_v31 = vadd.f32 %v2149_v30, %v1794_v50  ;;  %v1867_v32 = vpop.f32.mrb[17].mxu0 }
 0xd39   :  { %v1868_v33 = vadd.f32 %v1867_v32, %v1794_v50 }
 0xd3a   :  { %v1877_v34 = vadd.f32 %v1873_v31, %v1786_v28 }
 0xd3b   :  { %v1876_v35 = vadd.f32 %v1868_v33, %v1785_v24 }
 0xd3c   :  { %v1881_v36 = vsel %vm135_vm0, %v1877_v34, 0.0 }
 0xd3d   :  { %1882 = vadd.xlane.f32.xlu1 %v1881_v36  ;;  %v1878_v37 = vsel %vm135_vm0, %v1876_v35, 0.0 }
 0xd3e   :  { %1879 = vadd.xlane.f32.xlu0 %v1878_v37 }
 0xdca   :  { %v1883_v38 = vpop.xlane.xlu1 %1882 }
 0xdcb   :  { %v1885_v39 = vmul.f32 0.03125, %v1883_v38  ;;  %v1880_v40 = vpop.xlane.xlu0 %1879 }
 0xdcc   :  { %v1884_v41 = vmul.f32 0.03125, %v1880_v40 }
 0xdcd   :  { %v1887_v42 = vsub.f32 %v1877_v34, %v1885_v39 }
 0xdce   :  { %v1886_v43 = vsub.f32 %v1876_v35, %v1884_v41 }
 0xdcf   :  { %v1889_v51 = vmul.f32 %v1887_v42, %v1887_v42 }
 0xdd0   :  { %v1888_v44 = vmul.f32 %v1886_v43, %v1886_v43 }
 0xdd1   :  { %v1893_v45 = vsel %vm135_vm0, %v1889_v51, 0.0 }
 0xdd2   :  { %1894 = vadd.xlane.f32.xlu1 %v1893_v45  ;;  %v1890_v46 = vsel %vm135_vm0, %v1888_v44, 0.0 }
 0xdd3   :  { %1891 = vadd.xlane.f32.xlu0 %v1890_v46 }
 0xe5f   :  { %v1895_v47 = vpop.xlane.xlu1 %1894 }
 0xe60   :  { %v1897_v48 = vmul.f32 0.03125, %v1895_v47  ;;  %v1892_v49 = vpop.xlane.xlu0 %1891 }
 0xe61   :  { %v1896_v52 = vmul.f32 0.03125, %v1892_v49 }
 0xe62   :  { %v1899_v53 = vadd.f32 1e-05, %v1897_v48 }
 0xe63   :  { %v1898_v54 = vadd.f32 1e-05, %v1896_v52 }
 0xe64   :  { %2235 = vrsqrt.f32 %v1899_v53 }
 0xe65   :  { %2237 = vrsqrt.f32 %v1898_v54 }
 0xe6e   :  { %v2236_v18 = vpop.eup %2235 }
 0xe6f   :  { %v2238_v19 = vpop.eup %2237  ;;  %v1903_v57 = vmul.f32 %v2236_v18, %v1887_v42 }
 0xe70   :  { %v1902_v59 = vmul.f32 %v2238_v19, %v1886_v43 }
 0xe71   :  { %v1909_v60 = vmul.f32 %v1907_v17, %v1903_v57 }
 0xe72   :  { %v1908_v13 = vmul.f32 %v1907_v17, %v1902_v59 }
 0xe73   :  { %v1915_v61 = vadd.f32 %v1913_v58, %v1909_v60 }
 0xe74   :  { %v1914_v62 = vadd.f32 %v1913_v58, %v1908_v13 }
 0xe75   :  { %1917 = vst.msk [vmem:[#allocation15 + $0x8] sm:$0xff] %vm135_vm0, %v1915_v61 }
 0xe76   :  { %1916 = vst.msk [vmem:[#allocation15] sm:$0xff] %vm135_vm0, %v1914_v62 }
 0xe77   :  { %2404 = shalt.err (!%p2401_p4)
}
 0xe78   :  { %s2405_s1 = scalar_lea.hbm %s2819_s8, 256 }
 0xe79   :  { %p2406_p5 = scmp.ne.s32.totalorder %s2819_s8, %s2405_s1  ;;  %p2409_p6 = scmp.lt.u32.totalorder %s2405_s1, %s2819_s8 }
 0xe7b   :  { %p2411_p7 = pnand %p2409_p6, %p2406_p5 }
 0xe7d   :  { %2414 = shalt.err (!%p2411_p7)
}
 0xe7e   :  { %1929 = dma.vmem_to_hbm [thread:$0]  %s1924_s25, 256, %s2819_s8, [#allocation5], %s2427_s17, %s2427_s17, %s2428_s18  }
 0xe7f   :  { %2423 = dma.done.wait [#allocation5], 256  }
 0xe80   :  { %2424 = vsyncadd [#allocation5], 4294967040 }
 0xe81   :  { %1933 = vsyncpa [#allocation4], 1 }
 0xe82   :  { %1934 = vsyncpa [#allocation7], 1 }
 0xe83   :  { %1935 = vsyncpa [#allocation10], 1 }
 0xe84   :  { %1936 = vsyncpa [#allocation13], 1 }
 0xe85   :  { %1937 = vsyncpa [#allocation5], 1 }

</bundles_post_ra>
